<compile_context>
chip_gen: v5e
topology: v5e:2x2
jax: 0.10.0
libtpu: 0.0.40
codegen_flags: <defaults>
</compile_context>

<pallas_src>
import functools

import jax
import jax.numpy as jnp
import numpy as np
from jax import lax
from jax.experimental import pallas as pl
from jax.experimental.pallas import tpu as pltpu


def _round_up(x, m):
    return ((x + m - 1) // m) * m


def _pad2(a, rows, cols):
    pr, pc = rows - a.shape[0], cols - a.shape[1]
    if pr or pc:
        a = jnp.pad(a, ((0, pr), (0, pc)))
    return a


def _pick_time_chunk(T):
    # Bounded unroll (perf review): cap the chunk length at 32.
    for cand in (32, 16, 8, 4, 2, 1):
        if T % cand == 0:
            return cand
    return 1


# ----------------------------------------------------------------------------
# Fused kernel: all RNN layers (wavefront-interleaved) + sigmoid readout,
# one time-chunk per grid step.  All in-kernel tiles are time-major and padded
# to full (8, 128) vreg tiles.
# ----------------------------------------------------------------------------
def _make_fused_rnn_kernel(L, B, B_pad, TT, H, H_pad, O, O_pad):
    def kernel(*refs):
        x_ref = refs[0]                                # (TT, B_pad, I) time-major chunk of x
        layer_refs = refs[1:1 + 3 * L]                 # per layer: W_ih (Din,H_pad), W_hh (H_pad,H_pad), bias (1,H_pad)
        h0_ref = refs[1 + 3 * L]                       # (L, B_pad, H_pad)
        wro_ref = refs[2 + 3 * L]                      # (H_pad, O_pad)
        bro_ref = refs[3 + 3 * L]                      # (1, O_pad)
        out_ref = refs[4 + 3 * L]                      # (TT, B, O)  time-major outputs
        hs_ref = refs[5 + 3 * L]                       # (TT, B, H)
        hcarry_scr = refs[6 + 3 * L]                   # (L, B_pad, H_pad)  carried recurrent state
        ys_scr = refs[7 + 3 * L]                       # (TT, B_pad, H_pad) last layer's chunk outputs

        # First chunk: seed the carried recurrent state with h0.
        @pl.when(pl.program_id(0) == 0)
        def _():
            hcarry_scr[...] = h0_ref[...]

        # Weight/bias loads hoisted out of the wavefront loop.
        w_ih = [layer_refs[3 * l][...] for l in range(L)]
        w_hh = [layer_refs[3 * l + 1][...] for l in range(L)]
        bias = [layer_refs[3 * l + 2][...] for l in range(L)]
        mxu_dtype = w_hh[0].dtype                      # f32 or bf16; accumulation is always f32

        # Layer-0 input projection hoisted over the whole chunk: one big MXU matmul.
        in_dim = x_ref.shape[-1]
        x_flat = x_ref[...].reshape(TT * B_pad, in_dim).astype(mxu_dtype)
        proj0 = (jnp.dot(x_flat, w_ih[0], preferred_element_type=jnp.float32)
                 + bias[0]).reshape(TT, B_pad, H_pad)

        # Per-layer recurrent state (carried across chunks via hcarry_scr).
        h = [hcarry_scr[l] for l in range(L)]
        # prev[l] = layer l's output at its most recently computed timestep.
        prev = [None] * L

        # Wavefront: at step s, layer l advances timestep t = s - l.  Active layers
        # only read step-(s-1) values, so their matmuls are independent.
        for s in range(TT + L - 1):
            new_h = list(h)
            new_prev = list(prev)
            for l in range(L):
                t = s - l
                if 0 <= t < TT:
                    if l == 0:
                        pre = proj0[t] + jnp.dot(h[0].astype(mxu_dtype), w_hh[0],
                                                 preferred_element_type=jnp.float32)
                    else:
                        pre = (jnp.dot(prev[l - 1].astype(mxu_dtype), w_ih[l],
                                       preferred_element_type=jnp.float32)
                               + jnp.dot(h[l].astype(mxu_dtype), w_hh[l],
                                         preferred_element_type=jnp.float32)
                               + bias[l])
                    hl = jnp.maximum(pre, 0.0)         # ReLU nonlinearity (f32)
                    new_h[l] = hl
                    new_prev[l] = hl
                    if l == L - 1:
                        ys_scr[t] = hl                 # one full unmasked (B_pad,128k) tile store / step
            h, prev = new_h, new_prev

        # Carry each layer's state into the next time chunk.
        for l in range(L):
            hcarry_scr[l] = h[l]

        # Fused readout over the whole chunk: sigmoid(h_seq @ W_ro + b_ro).
        ys = ys_scr[...]                                             # (TT, B_pad, H_pad)
        logits = (jnp.dot(ys.reshape(TT * B_pad, H_pad).astype(mxu_dtype), wro_ref[...],
                          preferred_element_type=jnp.float32) + bro_ref[...])
        out_full = jax.nn.sigmoid(logits).reshape(TT, B_pad, O_pad)

        # Strip the batch/lane padding once per chunk and write the outputs.
        hs_ref[...] = ys[:, :B, :H].astype(hs_ref.dtype)
        out_ref[...] = out_full[:, :B, :O].astype(out_ref.dtype)

    return kernel


# ----------------------------------------------------------------------------
# Forward pass (mirrors RNN.forward): out = sigmoid(read_out(rnn(x, h)[0]))
# ----------------------------------------------------------------------------
@functools.partial(jax.jit, static_argnames=("t_chunk", "mxu_dtype"))
def rnn_forward(params, x, h=None, t_chunk=None, mxu_dtype=jnp.float32):
    """x: (B, T, I) batch-first.  Returns (out, hidden_state):
       out (B, T, O), hidden_state (B, T, H)."""
    B, T, I = x.shape
    layers = params["layers"]
    L = len(layers)
    H = layers[0]["w_hh_t"].shape[0]
    O = params["w_ro_t"].shape[1]

    B_pad = _round_up(B, 8)        # full sublane tiles for the per-step state
    H_pad = _round_up(H, 128)      # full lane tiles for hidden features
    O_pad = _round_up(O, 128)

    if h is None:
        h = jnp.zeros((L, B, H), jnp.float32)

    TT = t_chunk if t_chunk is not None else _pick_time_chunk(T)
    assert T % TT == 0, "sequence length must be divisible by the time chunk"

    # ---- layout plumbing (thin XLA ops outside the kernel) ----
    x_tm = jnp.transpose(x.astype(jnp.float32), (1, 0, 2))            # (T, B, I)
    x_tm = jnp.pad(x_tm, ((0, 0), (0, B_pad - B), (0, 0)))            # (T, B_pad, I)
    h0 = jnp.pad(h.astype(jnp.float32),
                 ((0, 0), (0, B_pad - B), (0, H_pad - H)))            # (L, B_pad, H_pad)

    w_item = np.dtype(mxu_dtype).itemsize
    inputs = [x_tm]
    in_specs = [pl.BlockSpec((TT, B_pad, I), lambda c: (c, 0, 0))]
    weight_bytes = 0
    for li, lp in enumerate(layers):
        d_in = lp["w_ih_t"].shape[0]
        d_in_pad = d_in if li == 0 else H_pad
        w_ih = _pad2(lp["w_ih_t"], d_in_pad, H_pad).astype(mxu_dtype)
        w_hh = _pad2(lp["w_hh_t"], H_pad, H_pad).astype(mxu_dtype)
        bias = _pad2(lp["bias"], 1, H_pad)                            # bias stays f32
        inputs += [w_ih, w_hh, bias]
        in_specs += [
            pl.BlockSpec((d_in_pad, H_pad), lambda c: (0, 0)),        # constant index -> DMA'd once
            pl.BlockSpec((H_pad, H_pad), lambda c: (0, 0)),
            pl.BlockSpec((1, H_pad), lambda c: (0, 0)),
        ]
        weight_bytes += (d_in_pad * H_pad + H_pad * H_pad) * w_item + H_pad * 4
    w_ro = _pad2(params["w_ro_t"], H_pad, O_pad).astype(mxu_dtype)
    b_ro = _pad2(params["b_ro"], 1, O_pad)
    inputs += [h0, w_ro, b_ro]
    in_specs += [
        pl.BlockSpec((L, B_pad, H_pad), lambda c: (0, 0, 0)),
        pl.BlockSpec((H_pad, O_pad), lambda c: (0, 0)),
        pl.BlockSpec((1, O_pad), lambda c: (0, 0)),
    ]
    weight_bytes += H_pad * O_pad * w_item + O_pad * 4 + L * B_pad * H_pad * 4

    # ---- shape-derived VMEM budget (review: no hard-coded 32 MiB; v7x has 64 MiB) ----
    block_bytes = 4 * (TT * B_pad * I + TT * B * O + TT * B * H)      # pipelined x/out/hs blocks
    scratch_bytes = 4 * (L * B_pad * H_pad + TT * B_pad * H_pad)
    temp_bytes = 4 * TT * B_pad * (H_pad + O_pad) + (2 << 20)         # proj0 + logits + headroom
    vmem_needed = 2 * (weight_bytes + block_bytes) + scratch_bytes + temp_bytes
    vmem_limit = int(min(max(2 * vmem_needed, 16 << 20), 64 << 20))

    # ---- advisory cost model for the XLA scheduler ----
    flops = (2 * B * T * (I * H + H * H)
             + 2 * B * T * (2 * H * H) * (L - 1)
             + 2 * B * T * H * O)
    bytes_accessed = 4 * B * T * (I + O + H) + weight_bytes
    cost = pl.CostEstimate(flops=int(flops), transcendentals=int(B * T * O),
                           bytes_accessed=int(bytes_accessed))

    kernel = _make_fused_rnn_kernel(L, B, B_pad, TT, H, H_pad, O, O_pad)
    out_tm, hs_tm = pl.pallas_call(
        kernel,
        grid=(T // TT,),
        out_shape=(
            jax.ShapeDtypeStruct((T, B, O), jnp.float32),
            jax.ShapeDtypeStruct((T, B, H), jnp.float32),
        ),
        in_specs=in_specs,
        out_specs=(
            pl.BlockSpec((TT, B, O), lambda c: (c, 0, 0)),
            pl.BlockSpec((TT, B, H), lambda c: (c, 0, 0)),
        ),
        scratch_shapes=[
            pltpu.VMEM((L, B_pad, H_pad), jnp.float32),   # recurrent state carried across chunks
            pltpu.VMEM((TT, B_pad, H_pad), jnp.float32),  # last layer's hidden sequence (this chunk)
        ],
        compiler_params=pltpu.CompilerParams(
            # Time chunks are sequential (carried recurrent state).  A second "parallel"
            # batch axis (v7x megacore) only pays off for B >= 2 sublane tiles; B is
            # tiny here so it is intentionally omitted.
            dimension_semantics=("arbitrary",),
            vmem_limit_bytes=vmem_limit,
        ),
        cost_estimate=cost,
    )(*inputs)

    # Back to the module's batch-first contract (layout plumbing only).
    return jnp.transpose(out_tm, (1, 0, 2)), jnp.transpose(hs_tm, (1, 0, 2))


# ----------------------------------------------------------------------------
# Parameter init (PyTorch-style uniform(-1/sqrt(H), 1/sqrt(H)))
# ----------------------------------------------------------------------------
def init_params(key, input_size, hidden_size, num_layers, output_size):
    bound = 1.0 / np.sqrt(hidden_size)
    params = {"layers": []}
    for l in range(num_layers):
        in_sz = input_size if l == 0 else hidden_size
        key, k1, k2, k3, k4 = jax.random.split(key, 5)
        w_ih = jax.random.uniform(k1, (hidden_size, in_sz), jnp.float32, -bound, bound)
        w_hh = jax.random.uniform(k2, (hidden_size, hidden_size), jnp.float32, -bound, bound)
        b_ih = jax.random.uniform(k3, (hidden_size,), jnp.float32, -bound, bound)
        b_hh = jax.random.uniform(k4, (hidden_size,), jnp.float32, -bound, bound)
        params["layers"].append(
            dict(
                w_ih_t=w_ih.T,                               # (in, H)
                w_hh_t=w_hh.T,                               # (H, H)
                bias=(b_ih + b_hh).reshape(1, hidden_size),  # (1, H)
            )
        )
    key, k5, k6 = jax.random.split(key, 3)
    w_ro = jax.random.uniform(k5, (output_size, hidden_size), jnp.float32, -bound, bound)
    b_ro = jax.random.uniform(k6, (output_size,), jnp.float32, -bound, bound)
    params["w_ro_t"] = w_ro.T                                # (H, O)
    params["b_ro"] = b_ro.reshape(1, output_size)            # (1, O)
    return params


# ----------------------------------------------------------------------------
# Pure-JAX reference for correctness check
# ----------------------------------------------------------------------------
def rnn_forward_ref(params, x, h=None):
    B, T, _ = x.shape
    H = params["layers"][0]["w_hh_t"].shape[0]
    L = len(params["layers"])
    if h is None:
        h = jnp.zeros((L, B, H), jnp.float32)
    cur = x.astype(jnp.float32)
    for l, lp in enumerate(params["layers"]):
        def step(h_prev, xt, lp=lp):
            h_new = jnp.maximum(xt @ lp["w_ih_t"] + h_prev @ lp["w_hh_t"] + lp["bias"], 0.0)
            return h_new, h_new
        _, hs = lax.scan(step, h[l], jnp.transpose(cur, (1, 0, 2)))
        cur = jnp.transpose(hs, (1, 0, 2))
    out = jax.nn.sigmoid(cur @ params["w_ro_t"] + params["b_ro"])
    return out, cur


# ----------------------------------------------------------------------------
if __name__ == "__main__":
    input_size, hidden_size, num_layers, output_size = 4, 32, 2, 4
    batch_size, seq_len = 2, 16

    key = jax.random.PRNGKey(0)
    kp, kx = jax.random.split(key)
    params = init_params(kp, input_size, hidden_size, num_layers, output_size)
    x = jax.random.normal(kx, (batch_size, seq_len, input_size), jnp.float32)

    # t_chunk=8 -> grid of 2 time chunks, exercising the carried-state / pipelined path.
    out, hidden_state = rnn_forward(params, x, t_chunk=8)
    out, hidden_state = jax.block_until_ready((out, hidden_state))

    out_want, hs_want = rnn_forward_ref(params, x)
    assert out.shape == (batch_size, seq_len, output_size)
    assert hidden_state.shape == (batch_size, seq_len, hidden_size)
    np.testing.assert_allclose(np.asarray(out), np.asarray(out_want), rtol=2e-5, atol=2e-5)
    np.testing.assert_allclose(np.asarray(hidden_state), np.asarray(hs_want), rtol=2e-5, atol=2e-5)

    # Reduced-precision fast path: bf16 weights / MXU inputs, f32 accumulation.
    # Only the sigmoid output is checked (loose tolerance); the recurrent hidden state
    # legitimately drifts more under bf16 weight rounding.
    out_bf, hs_bf = rnn_forward(params, x, t_chunk=8, mxu_dtype=jnp.bfloat16)
    out_bf, hs_bf = jax.block_until_ready((out_bf, hs_bf))
    np.testing.assert_allclose(np.asarray(out_bf), np.asarray(out_want), rtol=5e-2, atol=5e-2)
    assert np.isfinite(np.asarray(hs_bf)).all()

    print("KERNEL_OK")
</pallas_src>

<mosaic_0001>
module attributes {stable_mosaic.version = 11 : i64} {
  func.func @kernel(%arg0: i32, %arg1: memref<8x8x4xf32, #tpu.memory_space<vmem>>, %arg2: memref<4x128xf32, #tpu.memory_space<vmem>>, %arg3: memref<128x128xf32, #tpu.memory_space<vmem>>, %arg4: memref<1x128xf32, #tpu.memory_space<vmem>>, %arg5: memref<128x128xf32, #tpu.memory_space<vmem>>, %arg6: memref<128x128xf32, #tpu.memory_space<vmem>>, %arg7: memref<1x128xf32, #tpu.memory_space<vmem>>, %arg8: memref<2x8x128xf32, #tpu.memory_space<vmem>>, %arg9: memref<128x128xf32, #tpu.memory_space<vmem>>, %arg10: memref<1x128xf32, #tpu.memory_space<vmem>>, %arg11: memref<8x2x4xf32, #tpu.memory_space<vmem>>, %arg12: memref<8x2x32xf32, #tpu.memory_space<vmem>>, %arg13: memref<2x8x128xf32, #tpu.memory_space<vmem>>, %arg14: memref<8x8x128xf32, #tpu.memory_space<vmem>>) attributes {dimension_semantics = [#tpu.dimension_semantics<arbitrary>], iteration_bounds = array<i64: 2>, scalar_prefetch = 0 : i64, scratch_operands = 2 : i64, tpu.core_type = #tpu.core_type<tc>, window_params = [{transform_indices = @transform_0, window_bounds = array<i64: 8, 8, 4>}, {pipeline_mode = #tpu.pipeline_mode<synchronous>, transform_indices = @transform_1, window_bounds = array<i64: 4, 128>}, {pipeline_mode = #tpu.pipeline_mode<synchronous>, transform_indices = @transform_2, window_bounds = array<i64: 128, 128>}, {pipeline_mode = #tpu.pipeline_mode<synchronous>, transform_indices = @transform_3, window_bounds = array<i64: 1, 128>}, {pipeline_mode = #tpu.pipeline_mode<synchronous>, transform_indices = @transform_4, window_bounds = array<i64: 128, 128>}, {pipeline_mode = #tpu.pipeline_mode<synchronous>, transform_indices = @transform_5, window_bounds = array<i64: 128, 128>}, {pipeline_mode = #tpu.pipeline_mode<synchronous>, transform_indices = @transform_6, window_bounds = array<i64: 1, 128>}, {pipeline_mode = #tpu.pipeline_mode<synchronous>, transform_indices = @transform_7, window_bounds = array<i64: 2, 8, 128>}, {pipeline_mode = #tpu.pipeline_mode<synchronous>, transform_indices = @transform_8, window_bounds = array<i64: 128, 128>}, {pipeline_mode = #tpu.pipeline_mode<synchronous>, transform_indices = @transform_9, window_bounds = array<i64: 1, 128>}, {transform_indices = @transform_10, window_bounds = array<i64: 8, 2, 4>}, {transform_indices = @transform_11, window_bounds = array<i64: 8, 2, 32>}]} {
    %c0_i32 = arith.constant 0 : i32
    %0 = arith.cmpi eq, %arg0, %c0_i32 : i32
    %1 = arith.extui %0 : i1 to i32
    %c0_i32_0 = arith.constant 0 : i32
    %2 = arith.cmpi ne, %1, %c0_i32_0 : i32
    scf.if %2 {
      %c0_99 = arith.constant 0 : index
      %c0_100 = arith.constant 0 : index
      %c0_101 = arith.constant 0 : index
      %170 = vector.load %arg8[%c0_99, %c0_100, %c0_101] : memref<2x8x128xf32, #tpu.memory_space<vmem>>, vector<2x8x128xf32>
      %c0_102 = arith.constant 0 : index
      %c0_103 = arith.constant 0 : index
      %c0_104 = arith.constant 0 : index
      %171 = vector.load %arg13[%c0_102, %c0_103, %c0_104] : memref<2x8x128xf32, #tpu.memory_space<vmem>>, vector<2x8x128xf32>
      tpu.vector_store %arg13[%c0_102, %c0_103, %c0_104], %170 {strides = array<i32>} : memref<2x8x128xf32, #tpu.memory_space<vmem>>, vector<2x8x128xf32>,
    } else {
    }
    %c0 = arith.constant 0 : index
    %c0_1 = arith.constant 0 : index
    %3 = vector.load %arg2[%c0, %c0_1] : memref<4x128xf32, #tpu.memory_space<vmem>>, vector<4x128xf32>
    %c0_2 = arith.constant 0 : index
    %c0_3 = arith.constant 0 : index
    %4 = vector.load %arg5[%c0_2, %c0_3] : memref<128x128xf32, #tpu.memory_space<vmem>>, vector<128x128xf32>
    %c0_4 = arith.constant 0 : index
    %c0_5 = arith.constant 0 : index
    %5 = vector.load %arg3[%c0_4, %c0_5] : memref<128x128xf32, #tpu.memory_space<vmem>>, vector<128x128xf32>
    %c0_6 = arith.constant 0 : index
    %c0_7 = arith.constant 0 : index
    %6 = vector.load %arg6[%c0_6, %c0_7] : memref<128x128xf32, #tpu.memory_space<vmem>>, vector<128x128xf32>
    %c0_8 = arith.constant 0 : index
    %c0_9 = arith.constant 0 : index
    %7 = vector.load %arg4[%c0_8, %c0_9] : memref<1x128xf32, #tpu.memory_space<vmem>>, vector<1x128xf32>
    %c0_10 = arith.constant 0 : index
    %c0_11 = arith.constant 0 : index
    %8 = vector.load %arg7[%c0_10, %c0_11] : memref<1x128xf32, #tpu.memory_space<vmem>>, vector<1x128xf32>
    %c0_12 = arith.constant 0 : index
    %c0_13 = arith.constant 0 : index
    %c0_14 = arith.constant 0 : index
    %9 = vector.load %arg1[%c0_12, %c0_13, %c0_14] : memref<8x8x4xf32, #tpu.memory_space<vmem>>, vector<8x8x4xf32>
    %10 = vector.shape_cast %9 : vector<8x8x4xf32> to vector<64x4xf32>
    %cst = arith.constant dense<0.000000e+00> : vector<64x128xf32>
    %11 = tpu.matmul %10, %3, %cst {dimension_numbers = #tpu.dot_dimension_numbers<[1], [0], [0], [1], [0, 0, 1, 1], [], []>} : vector<64x4xf32>, vector<4x128xf32>, vector<64x128xf32> -> vector<64x128xf32>
    %12 = vector.broadcast %7 : vector<1x128xf32> to vector<64x128xf32>
    %13 = arith.addf %11, %12 : vector<64x128xf32>
    %14 = vector.shape_cast %13 : vector<64x128xf32> to vector<8x8x128xf32>
    %c0_15 = arith.constant 0 : index
    %c0_16 = arith.constant 0 : index
    %c0_17 = arith.constant 0 : index
    %15 = vector.load %arg13[%c0_15, %c0_16, %c0_17] : memref<2x8x128xf32, #tpu.memory_space<vmem>>, vector<1x8x128xf32>
    %16 = vector.shape_cast %15 : vector<1x8x128xf32> to vector<8x128xf32>
    %c1 = arith.constant 1 : index
    %c0_18 = arith.constant 0 : index
    %c0_19 = arith.constant 0 : index
    %17 = vector.load %arg13[%c1, %c0_18, %c0_19] : memref<2x8x128xf32, #tpu.memory_space<vmem>>, vector<1x8x128xf32>
    %18 = vector.shape_cast %17 : vector<1x8x128xf32> to vector<8x128xf32>
    %19 = vector.extract_strided_slice %14 {offsets = [0, 0, 0], sizes = [1, 8, 128], strides = [1, 1, 1]} : vector<8x8x128xf32> to vector<1x8x128xf32>
    %20 = vector.shape_cast %19 : vector<1x8x128xf32> to vector<8x128xf32>
    %cst_20 = arith.constant dense<0.000000e+00> : vector<8x128xf32>
    %21 = tpu.matmul %16, %5, %cst_20 {dimension_numbers = #tpu.dot_dimension_numbers<[1], [0], [0], [1], [0, 0, 1, 1], [], []>} : vector<8x128xf32>, vector<128x128xf32>, vector<8x128xf32> -> vector<8x128xf32>
    %22 = arith.addf %20, %21 : vector<8x128xf32>
    %cst_21 = arith.constant 0.000000e+00 : f32
    %23 = vector.broadcast %cst_21 : f32 to vector<8x128xf32>
    %24 = arith.maximumf %22, %23 : vector<8x128xf32>
    %25 = vector.extract_strided_slice %14 {offsets = [1, 0, 0], sizes = [1, 8, 128], strides = [1, 1, 1]} : vector<8x8x128xf32> to vector<1x8x128xf32>
    %26 = vector.shape_cast %25 : vector<1x8x128xf32> to vector<8x128xf32>
    %cst_22 = arith.constant dense<0.000000e+00> : vector<8x128xf32>
    %27 = tpu.matmul %24, %5, %cst_22 {dimension_numbers = #tpu.dot_dimension_numbers<[1], [0], [0], [1], [0, 0, 1, 1], [], []>} : vector<8x128xf32>, vector<128x128xf32>, vector<8x128xf32> -> vector<8x128xf32>
    %28 = arith.addf %26, %27 : vector<8x128xf32>
    %cst_23 = arith.constant 0.000000e+00 : f32
    %29 = vector.broadcast %cst_23 : f32 to vector<8x128xf32>
    %30 = arith.maximumf %28, %29 : vector<8x128xf32>
    %cst_24 = arith.constant dense<0.000000e+00> : vector<8x128xf32>
    %31 = tpu.matmul %24, %4, %cst_24 {dimension_numbers = #tpu.dot_dimension_numbers<[1], [0], [0], [1], [0, 0, 1, 1], [], []>} : vector<8x128xf32>, vector<128x128xf32>, vector<8x128xf32> -> vector<8x128xf32>
    %cst_25 = arith.constant dense<0.000000e+00> : vector<8x128xf32>
    %32 = tpu.matmul %18, %6, %cst_25 {dimension_numbers = #tpu.dot_dimension_numbers<[1], [0], [0], [1], [0, 0, 1, 1], [], []>} : vector<8x128xf32>, vector<128x128xf32>, vector<8x128xf32> -> vector<8x128xf32>
    %33 = arith.addf %31, %32 : vector<8x128xf32>
    %34 = vector.broadcast %8 : vector<1x128xf32> to vector<8x128xf32>
    %35 = arith.addf %33, %34 : vector<8x128xf32>
    %cst_26 = arith.constant 0.000000e+00 : f32
    %36 = vector.broadcast %cst_26 : f32 to vector<8x128xf32>
    %37 = arith.maximumf %35, %36 : vector<8x128xf32>
    %c0_27 = arith.constant 0 : index
    %c0_28 = arith.constant 0 : index
    %c0_29 = arith.constant 0 : index
    %38 = vector.load %arg14[%c0_27, %c0_28, %c0_29] : memref<8x8x128xf32, #tpu.memory_space<vmem>>, vector<1x8x128xf32>
    %39 = vector.shape_cast %38 : vector<1x8x128xf32> to vector<8x128xf32>
    %40 = vector.shape_cast %37 : vector<8x128xf32> to vector<1x8x128xf32>
    tpu.vector_store %arg14[%c0_27, %c0_28, %c0_29], %40 {strides = array<i32>} : memref<8x8x128xf32, #tpu.memory_space<vmem>>, vector<1x8x128xf32>,
    %41 = vector.extract_strided_slice %14 {offsets = [2, 0, 0], sizes = [1, 8, 128], strides = [1, 1, 1]} : vector<8x8x128xf32> to vector<1x8x128xf32>
    %42 = vector.shape_cast %41 : vector<1x8x128xf32> to vector<8x128xf32>
    %cst_30 = arith.constant dense<0.000000e+00> : vector<8x128xf32>
    %43 = tpu.matmul %30, %5, %cst_30 {dimension_numbers = #tpu.dot_dimension_numbers<[1], [0], [0], [1], [0, 0, 1, 1], [], []>} : vector<8x128xf32>, vector<128x128xf32>, vector<8x128xf32> -> vector<8x128xf32>
    %44 = arith.addf %42, %43 : vector<8x128xf32>
    %cst_31 = arith.constant 0.000000e+00 : f32
    %45 = vector.broadcast %cst_31 : f32 to vector<8x128xf32>
    %46 = arith.maximumf %44, %45 : vector<8x128xf32>
    %cst_32 = arith.constant dense<0.000000e+00> : vector<8x128xf32>
    %47 = tpu.matmul %30, %4, %cst_32 {dimension_numbers = #tpu.dot_dimension_numbers<[1], [0], [0], [1], [0, 0, 1, 1], [], []>} : vector<8x128xf32>, vector<128x128xf32>, vector<8x128xf32> -> vector<8x128xf32>
    %cst_33 = arith.constant dense<0.000000e+00> : vector<8x128xf32>
    %48 = tpu.matmul %37, %6, %cst_33 {dimension_numbers = #tpu.dot_dimension_numbers<[1], [0], [0], [1], [0, 0, 1, 1], [], []>} : vector<8x128xf32>, vector<128x128xf32>, vector<8x128xf32> -> vector<8x128xf32>
    %49 = arith.addf %47, %48 : vector<8x128xf32>
    %50 = vector.broadcast %8 : vector<1x128xf32> to vector<8x128xf32>
    %51 = arith.addf %49, %50 : vector<8x128xf32>
    %cst_34 = arith.constant 0.000000e+00 : f32
    %52 = vector.broadcast %cst_34 : f32 to vector<8x128xf32>
    %53 = arith.maximumf %51, %52 : vector<8x128xf32>
    %c1_35 = arith.constant 1 : index
    %c0_36 = arith.constant 0 : index
    %c0_37 = arith.constant 0 : index
    %54 = vector.load %arg14[%c1_35, %c0_36, %c0_37] : memref<8x8x128xf32, #tpu.memory_space<vmem>>, vector<1x8x128xf32>
    %55 = vector.shape_cast %54 : vector<1x8x128xf32> to vector<8x128xf32>
    %56 = vector.shape_cast %53 : vector<8x128xf32> to vector<1x8x128xf32>
    tpu.vector_store %arg14[%c1_35, %c0_36, %c0_37], %56 {strides = array<i32>} : memref<8x8x128xf32, #tpu.memory_space<vmem>>, vector<1x8x128xf32>,
    %57 = vector.extract_strided_slice %14 {offsets = [3, 0, 0], sizes = [1, 8, 128], strides = [1, 1, 1]} : vector<8x8x128xf32> to vector<1x8x128xf32>
    %58 = vector.shape_cast %57 : vector<1x8x128xf32> to vector<8x128xf32>
    %cst_38 = arith.constant dense<0.000000e+00> : vector<8x128xf32>
    %59 = tpu.matmul %46, %5, %cst_38 {dimension_numbers = #tpu.dot_dimension_numbers<[1], [0], [0], [1], [0, 0, 1, 1], [], []>} : vector<8x128xf32>, vector<128x128xf32>, vector<8x128xf32> -> vector<8x128xf32>
    %60 = arith.addf %58, %59 : vector<8x128xf32>
    %cst_39 = arith.constant 0.000000e+00 : f32
    %61 = vector.broadcast %cst_39 : f32 to vector<8x128xf32>
    %62 = arith.maximumf %60, %61 : vector<8x128xf32>
    %cst_40 = arith.constant dense<0.000000e+00> : vector<8x128xf32>
    %63 = tpu.matmul %46, %4, %cst_40 {dimension_numbers = #tpu.dot_dimension_numbers<[1], [0], [0], [1], [0, 0, 1, 1], [], []>} : vector<8x128xf32>, vector<128x128xf32>, vector<8x128xf32> -> vector<8x128xf32>
    %cst_41 = arith.constant dense<0.000000e+00> : vector<8x128xf32>
    %64 = tpu.matmul %53, %6, %cst_41 {dimension_numbers = #tpu.dot_dimension_numbers<[1], [0], [0], [1], [0, 0, 1, 1], [], []>} : vector<8x128xf32>, vector<128x128xf32>, vector<8x128xf32> -> vector<8x128xf32>
    %65 = arith.addf %63, %64 : vector<8x128xf32>
    %66 = vector.broadcast %8 : vector<1x128xf32> to vector<8x128xf32>
    %67 = arith.addf %65, %66 : vector<8x128xf32>
    %cst_42 = arith.constant 0.000000e+00 : f32
    %68 = vector.broadcast %cst_42 : f32 to vector<8x128xf32>
    %69 = arith.maximumf %67, %68 : vector<8x128xf32>
    %c2 = arith.constant 2 : index
    %c0_43 = arith.constant 0 : index
    %c0_44 = arith.constant 0 : index
    %70 = vector.load %arg14[%c2, %c0_43, %c0_44] : memref<8x8x128xf32, #tpu.memory_space<vmem>>, vector<1x8x128xf32>
    %71 = vector.shape_cast %70 : vector<1x8x128xf32> to vector<8x128xf32>
    %72 = vector.shape_cast %69 : vector<8x128xf32> to vector<1x8x128xf32>
    tpu.vector_store %arg14[%c2, %c0_43, %c0_44], %72 {strides = array<i32>} : memref<8x8x128xf32, #tpu.memory_space<vmem>>, vector<1x8x128xf32>,
    %73 = vector.extract_strided_slice %14 {offsets = [4, 0, 0], sizes = [1, 8, 128], strides = [1, 1, 1]} : vector<8x8x128xf32> to vector<1x8x128xf32>
    %74 = vector.shape_cast %73 : vector<1x8x128xf32> to vector<8x128xf32>
    %cst_45 = arith.constant dense<0.000000e+00> : vector<8x128xf32>
    %75 = tpu.matmul %62, %5, %cst_45 {dimension_numbers = #tpu.dot_dimension_numbers<[1], [0], [0], [1], [0, 0, 1, 1], [], []>} : vector<8x128xf32>, vector<128x128xf32>, vector<8x128xf32> -> vector<8x128xf32>
    %76 = arith.addf %74, %75 : vector<8x128xf32>
    %cst_46 = arith.constant 0.000000e+00 : f32
    %77 = vector.broadcast %cst_46 : f32 to vector<8x128xf32>
    %78 = arith.maximumf %76, %77 : vector<8x128xf32>
    %cst_47 = arith.constant dense<0.000000e+00> : vector<8x128xf32>
    %79 = tpu.matmul %62, %4, %cst_47 {dimension_numbers = #tpu.dot_dimension_numbers<[1], [0], [0], [1], [0, 0, 1, 1], [], []>} : vector<8x128xf32>, vector<128x128xf32>, vector<8x128xf32> -> vector<8x128xf32>
    %cst_48 = arith.constant dense<0.000000e+00> : vector<8x128xf32>
    %80 = tpu.matmul %69, %6, %cst_48 {dimension_numbers = #tpu.dot_dimension_numbers<[1], [0], [0], [1], [0, 0, 1, 1], [], []>} : vector<8x128xf32>, vector<128x128xf32>, vector<8x128xf32> -> vector<8x128xf32>
    %81 = arith.addf %79, %80 : vector<8x128xf32>
    %82 = vector.broadcast %8 : vector<1x128xf32> to vector<8x128xf32>
    %83 = arith.addf %81, %82 : vector<8x128xf32>
    %cst_49 = arith.constant 0.000000e+00 : f32
    %84 = vector.broadcast %cst_49 : f32 to vector<8x128xf32>
    %85 = arith.maximumf %83, %84 : vector<8x128xf32>
    %c3 = arith.constant 3 : index
    %c0_50 = arith.constant 0 : index
    %c0_51 = arith.constant 0 : index
    %86 = vector.load %arg14[%c3, %c0_50, %c0_51] : memref<8x8x128xf32, #tpu.memory_space<vmem>>, vector<1x8x128xf32>
    %87 = vector.shape_cast %86 : vector<1x8x128xf32> to vector<8x128xf32>
    %88 = vector.shape_cast %85 : vector<8x128xf32> to vector<1x8x128xf32>
    tpu.vector_store %arg14[%c3, %c0_50, %c0_51], %88 {strides = array<i32>} : memref<8x8x128xf32, #tpu.memory_space<vmem>>, vector<1x8x128xf32>,
    %89 = vector.extract_strided_slice %14 {offsets = [5, 0, 0], sizes = [1, 8, 128], strides = [1, 1, 1]} : vector<8x8x128xf32> to vector<1x8x128xf32>
    %90 = vector.shape_cast %89 : vector<1x8x128xf32> to vector<8x128xf32>
    %cst_52 = arith.constant dense<0.000000e+00> : vector<8x128xf32>
    %91 = tpu.matmul %78, %5, %cst_52 {dimension_numbers = #tpu.dot_dimension_numbers<[1], [0], [0], [1], [0, 0, 1, 1], [], []>} : vector<8x128xf32>, vector<128x128xf32>, vector<8x128xf32> -> vector<8x128xf32>
    %92 = arith.addf %90, %91 : vector<8x128xf32>
    %cst_53 = arith.constant 0.000000e+00 : f32
    %93 = vector.broadcast %cst_53 : f32 to vector<8x128xf32>
    %94 = arith.maximumf %92, %93 : vector<8x128xf32>
    %cst_54 = arith.constant dense<0.000000e+00> : vector<8x128xf32>
    %95 = tpu.matmul %78, %4, %cst_54 {dimension_numbers = #tpu.dot_dimension_numbers<[1], [0], [0], [1], [0, 0, 1, 1], [], []>} : vector<8x128xf32>, vector<128x128xf32>, vector<8x128xf32> -> vector<8x128xf32>
    %cst_55 = arith.constant dense<0.000000e+00> : vector<8x128xf32>
    %96 = tpu.matmul %85, %6, %cst_55 {dimension_numbers = #tpu.dot_dimension_numbers<[1], [0], [0], [1], [0, 0, 1, 1], [], []>} : vector<8x128xf32>, vector<128x128xf32>, vector<8x128xf32> -> vector<8x128xf32>
    %97 = arith.addf %95, %96 : vector<8x128xf32>
    %98 = vector.broadcast %8 : vector<1x128xf32> to vector<8x128xf32>
    %99 = arith.addf %97, %98 : vector<8x128xf32>
    %cst_56 = arith.constant 0.000000e+00 : f32
    %100 = vector.broadcast %cst_56 : f32 to vector<8x128xf32>
    %101 = arith.maximumf %99, %100 : vector<8x128xf32>
    %c4 = arith.constant 4 : index
    %c0_57 = arith.constant 0 : index
    %c0_58 = arith.constant 0 : index
    %102 = vector.load %arg14[%c4, %c0_57, %c0_58] : memref<8x8x128xf32, #tpu.memory_space<vmem>>, vector<1x8x128xf32>
    %103 = vector.shape_cast %102 : vector<1x8x128xf32> to vector<8x128xf32>
    %104 = vector.shape_cast %101 : vector<8x128xf32> to vector<1x8x128xf32>
    tpu.vector_store %arg14[%c4, %c0_57, %c0_58], %104 {strides = array<i32>} : memref<8x8x128xf32, #tpu.memory_space<vmem>>, vector<1x8x128xf32>,
    %105 = vector.extract_strided_slice %14 {offsets = [6, 0, 0], sizes = [1, 8, 128], strides = [1, 1, 1]} : vector<8x8x128xf32> to vector<1x8x128xf32>
    %106 = vector.shape_cast %105 : vector<1x8x128xf32> to vector<8x128xf32>
    %cst_59 = arith.constant dense<0.000000e+00> : vector<8x128xf32>
    %107 = tpu.matmul %94, %5, %cst_59 {dimension_numbers = #tpu.dot_dimension_numbers<[1], [0], [0], [1], [0, 0, 1, 1], [], []>} : vector<8x128xf32>, vector<128x128xf32>, vector<8x128xf32> -> vector<8x128xf32>
    %108 = arith.addf %106, %107 : vector<8x128xf32>
    %cst_60 = arith.constant 0.000000e+00 : f32
    %109 = vector.broadcast %cst_60 : f32 to vector<8x128xf32>
    %110 = arith.maximumf %108, %109 : vector<8x128xf32>
    %cst_61 = arith.constant dense<0.000000e+00> : vector<8x128xf32>
    %111 = tpu.matmul %94, %4, %cst_61 {dimension_numbers = #tpu.dot_dimension_numbers<[1], [0], [0], [1], [0, 0, 1, 1], [], []>} : vector<8x128xf32>, vector<128x128xf32>, vector<8x128xf32> -> vector<8x128xf32>
    %cst_62 = arith.constant dense<0.000000e+00> : vector<8x128xf32>
    %112 = tpu.matmul %101, %6, %cst_62 {dimension_numbers = #tpu.dot_dimension_numbers<[1], [0], [0], [1], [0, 0, 1, 1], [], []>} : vector<8x128xf32>, vector<128x128xf32>, vector<8x128xf32> -> vector<8x128xf32>
    %113 = arith.addf %111, %112 : vector<8x128xf32>
    %114 = vector.broadcast %8 : vector<1x128xf32> to vector<8x128xf32>
    %115 = arith.addf %113, %114 : vector<8x128xf32>
    %cst_63 = arith.constant 0.000000e+00 : f32
    %116 = vector.broadcast %cst_63 : f32 to vector<8x128xf32>
    %117 = arith.maximumf %115, %116 : vector<8x128xf32>
    %c5 = arith.constant 5 : index
    %c0_64 = arith.constant 0 : index
    %c0_65 = arith.constant 0 : index
    %118 = vector.load %arg14[%c5, %c0_64, %c0_65] : memref<8x8x128xf32, #tpu.memory_space<vmem>>, vector<1x8x128xf32>
    %119 = vector.shape_cast %118 : vector<1x8x128xf32> to vector<8x128xf32>
    %120 = vector.shape_cast %117 : vector<8x128xf32> to vector<1x8x128xf32>
    tpu.vector_store %arg14[%c5, %c0_64, %c0_65], %120 {strides = array<i32>} : memref<8x8x128xf32, #tpu.memory_space<vmem>>, vector<1x8x128xf32>,
    %121 = vector.extract_strided_slice %14 {offsets = [7, 0, 0], sizes = [1, 8, 128], strides = [1, 1, 1]} : vector<8x8x128xf32> to vector<1x8x128xf32>
    %122 = vector.shape_cast %121 : vector<1x8x128xf32> to vector<8x128xf32>
    %cst_66 = arith.constant dense<0.000000e+00> : vector<8x128xf32>
    %123 = tpu.matmul %110, %5, %cst_66 {dimension_numbers = #tpu.dot_dimension_numbers<[1], [0], [0], [1], [0, 0, 1, 1], [], []>} : vector<8x128xf32>, vector<128x128xf32>, vector<8x128xf32> -> vector<8x128xf32>
    %124 = arith.addf %122, %123 : vector<8x128xf32>
    %cst_67 = arith.constant 0.000000e+00 : f32
    %125 = vector.broadcast %cst_67 : f32 to vector<8x128xf32>
    %126 = arith.maximumf %124, %125 : vector<8x128xf32>
    %cst_68 = arith.constant dense<0.000000e+00> : vector<8x128xf32>
    %127 = tpu.matmul %110, %4, %cst_68 {dimension_numbers = #tpu.dot_dimension_numbers<[1], [0], [0], [1], [0, 0, 1, 1], [], []>} : vector<8x128xf32>, vector<128x128xf32>, vector<8x128xf32> -> vector<8x128xf32>
    %cst_69 = arith.constant dense<0.000000e+00> : vector<8x128xf32>
    %128 = tpu.matmul %117, %6, %cst_69 {dimension_numbers = #tpu.dot_dimension_numbers<[1], [0], [0], [1], [0, 0, 1, 1], [], []>} : vector<8x128xf32>, vector<128x128xf32>, vector<8x128xf32> -> vector<8x128xf32>
    %129 = arith.addf %127, %128 : vector<8x128xf32>
    %130 = vector.broadcast %8 : vector<1x128xf32> to vector<8x128xf32>
    %131 = arith.addf %129, %130 : vector<8x128xf32>
    %cst_70 = arith.constant 0.000000e+00 : f32
    %132 = vector.broadcast %cst_70 : f32 to vector<8x128xf32>
    %133 = arith.maximumf %131, %132 : vector<8x128xf32>
    %c6 = arith.constant 6 : index
    %c0_71 = arith.constant 0 : index
    %c0_72 = arith.constant 0 : index
    %134 = vector.load %arg14[%c6, %c0_71, %c0_72] : memref<8x8x128xf32, #tpu.memory_space<vmem>>, vector<1x8x128xf32>
    %135 = vector.shape_cast %134 : vector<1x8x128xf32> to vector<8x128xf32>
    %136 = vector.shape_cast %133 : vector<8x128xf32> to vector<1x8x128xf32>
    tpu.vector_store %arg14[%c6, %c0_71, %c0_72], %136 {strides = array<i32>} : memref<8x8x128xf32, #tpu.memory_space<vmem>>, vector<1x8x128xf32>,
    %cst_73 = arith.constant dense<0.000000e+00> : vector<8x128xf32>
    %137 = tpu.matmul %126, %4, %cst_73 {dimension_numbers = #tpu.dot_dimension_numbers<[1], [0], [0], [1], [0, 0, 1, 1], [], []>} : vector<8x128xf32>, vector<128x128xf32>, vector<8x128xf32> -> vector<8x128xf32>
    %cst_74 = arith.constant dense<0.000000e+00> : vector<8x128xf32>
    %138 = tpu.matmul %133, %6, %cst_74 {dimension_numbers = #tpu.dot_dimension_numbers<[1], [0], [0], [1], [0, 0, 1, 1], [], []>} : vector<8x128xf32>, vector<128x128xf32>, vector<8x128xf32> -> vector<8x128xf32>
    %139 = arith.addf %137, %138 : vector<8x128xf32>
    %140 = vector.broadcast %8 : vector<1x128xf32> to vector<8x128xf32>
    %141 = arith.addf %139, %140 : vector<8x128xf32>
    %cst_75 = arith.constant 0.000000e+00 : f32
    %142 = vector.broadcast %cst_75 : f32 to vector<8x128xf32>
    %143 = arith.maximumf %141, %142 : vector<8x128xf32>
    %c7 = arith.constant 7 : index
    %c0_76 = arith.constant 0 : index
    %c0_77 = arith.constant 0 : index
    %144 = vector.load %arg14[%c7, %c0_76, %c0_77] : memref<8x8x128xf32, #tpu.memory_space<vmem>>, vector<1x8x128xf32>
    %145 = vector.shape_cast %144 : vector<1x8x128xf32> to vector<8x128xf32>
    %146 = vector.shape_cast %143 : vector<8x128xf32> to vector<1x8x128xf32>
    tpu.vector_store %arg14[%c7, %c0_76, %c0_77], %146 {strides = array<i32>} : memref<8x8x128xf32, #tpu.memory_space<vmem>>, vector<1x8x128xf32>,
    %c0_78 = arith.constant 0 : index
    %c0_79 = arith.constant 0 : index
    %c0_80 = arith.constant 0 : index
    %147 = vector.load %arg13[%c0_78, %c0_79, %c0_80] : memref<2x8x128xf32, #tpu.memory_space<vmem>>, vector<1x8x128xf32>
    %148 = vector.shape_cast %147 : vector<1x8x128xf32> to vector<8x128xf32>
    %149 = vector.shape_cast %126 : vector<8x128xf32> to vector<1x8x128xf32>
    tpu.vector_store %arg13[%c0_78, %c0_79, %c0_80], %149 {strides = array<i32>} : memref<2x8x128xf32, #tpu.memory_space<vmem>>, vector<1x8x128xf32>,
    %c1_81 = arith.constant 1 : index
    %c0_82 = arith.constant 0 : index
    %c0_83 = arith.constant 0 : index
    %150 = vector.load %arg13[%c1_81, %c0_82, %c0_83] : memref<2x8x128xf32, #tpu.memory_space<vmem>>, vector<1x8x128xf32>
    %151 = vector.shape_cast %150 : vector<1x8x128xf32> to vector<8x128xf32>
    %152 = vector.shape_cast %143 : vector<8x128xf32> to vector<1x8x128xf32>
    tpu.vector_store %arg13[%c1_81, %c0_82, %c0_83], %152 {strides = array<i32>} : memref<2x8x128xf32, #tpu.memory_space<vmem>>, vector<1x8x128xf32>,
    %c0_84 = arith.constant 0 : index
    %c0_85 = arith.constant 0 : index
    %c0_86 = arith.constant 0 : index
    %153 = vector.load %arg14[%c0_84, %c0_85, %c0_86] : memref<8x8x128xf32, #tpu.memory_space<vmem>>, vector<8x8x128xf32>
    %154 = vector.shape_cast %153 : vector<8x8x128xf32> to vector<64x128xf32>
    %c0_87 = arith.constant 0 : index
    %c0_88 = arith.constant 0 : index
    %155 = vector.load %arg9[%c0_87, %c0_88] : memref<128x128xf32, #tpu.memory_space<vmem>>, vector<128x128xf32>
    %cst_89 = arith.constant dense<0.000000e+00> : vector<64x128xf32>
    %156 = tpu.matmul %154, %155, %cst_89 {dimension_numbers = #tpu.dot_dimension_numbers<[1], [0], [0], [1], [0, 0, 1, 1], [], []>} : vector<64x128xf32>, vector<128x128xf32>, vector<64x128xf32> -> vector<64x128xf32>
    %c0_90 = arith.constant 0 : index
    %c0_91 = arith.constant 0 : index
    %157 = vector.load %arg10[%c0_90, %c0_91] : memref<1x128xf32, #tpu.memory_space<vmem>>, vector<1x128xf32>
    %158 = vector.broadcast %157 : vector<1x128xf32> to vector<64x128xf32>
    %159 = arith.addf %156, %158 : vector<64x128xf32>
    %160 = arith.negf %159 : vector<64x128xf32>
    %161 = math.exp %160 : vector<64x128xf32>
    %cst_92 = arith.constant 1.000000e+00 : f32
    %162 = vector.broadcast %cst_92 : f32 to vector<64x128xf32>
    %163 = arith.addf %162, %161 : vector<64x128xf32>
    %164 = arith.divf %162, %163 : vector<64x128xf32>
    %165 = vector.shape_cast %164 : vector<64x128xf32> to vector<8x8x128xf32>
    %166 = vector.extract_strided_slice %153 {offsets = [0, 0, 0], sizes = [8, 2, 32], strides = [1, 1, 1]} : vector<8x8x128xf32> to vector<8x2x32xf32>
    %c0_93 = arith.constant 0 : index
    %c0_94 = arith.constant 0 : index
    %c0_95 = arith.constant 0 : index
    %167 = vector.load %arg12[%c0_93, %c0_94, %c0_95] : memref<8x2x32xf32, #tpu.memory_space<vmem>>, vector<8x2x32xf32>
    tpu.vector_store %arg12[%c0_93, %c0_94, %c0_95], %166 {strides = array<i32>} : memref<8x2x32xf32, #tpu.memory_space<vmem>>, vector<8x2x32xf32>,
    %168 = vector.extract_strided_slice %165 {offsets = [0, 0, 0], sizes = [8, 2, 4], strides = [1, 1, 1]} : vector<8x8x128xf32> to vector<8x2x4xf32>
    %c0_96 = arith.constant 0 : index
    %c0_97 = arith.constant 0 : index
    %c0_98 = arith.constant 0 : index
    %169 = vector.load %arg11[%c0_96, %c0_97, %c0_98] : memref<8x2x4xf32, #tpu.memory_space<vmem>>, vector<8x2x4xf32>
    tpu.vector_store %arg11[%c0_96, %c0_97, %c0_98], %168 {strides = array<i32>} : memref<8x2x4xf32, #tpu.memory_space<vmem>>, vector<8x2x4xf32>,
    return
  }
  func.func @transform_0(%arg0: i32) -> (i32, i32, i32) {
    %c0_i32 = arith.constant 0 : i32
    %c0_i32_0 = arith.constant 0 : i32
    %c0_i32_1 = arith.constant 0 : i32
    return %arg0, %c0_i32, %c0_i32_0 : i32, i32, i32
  }
  func.func @transform_1(%arg0: i32) -> (i32, i32) {
    %c0_i32 = arith.constant 0 : i32
    %c0_i32_0 = arith.constant 0 : i32
    %c0_i32_1 = arith.constant 0 : i32
    return %c0_i32, %c0_i32_0 : i32, i32
  }
  func.func @transform_2(%arg0: i32) -> (i32, i32) {
    %c0_i32 = arith.constant 0 : i32
    %c0_i32_0 = arith.constant 0 : i32
    %c0_i32_1 = arith.constant 0 : i32
    return %c0_i32, %c0_i32_0 : i32, i32
  }
  func.func @transform_3(%arg0: i32) -> (i32, i32) {
    %c0_i32 = arith.constant 0 : i32
    %c0_i32_0 = arith.constant 0 : i32
    %c0_i32_1 = arith.constant 0 : i32
    return %c0_i32, %c0_i32_0 : i32, i32
  }
  func.func @transform_4(%arg0: i32) -> (i32, i32) {
    %c0_i32 = arith.constant 0 : i32
    %c0_i32_0 = arith.constant 0 : i32
    %c0_i32_1 = arith.constant 0 : i32
    return %c0_i32, %c0_i32_0 : i32, i32
  }
  func.func @transform_5(%arg0: i32) -> (i32, i32) {
    %c0_i32 = arith.constant 0 : i32
    %c0_i32_0 = arith.constant 0 : i32
    %c0_i32_1 = arith.constant 0 : i32
    return %c0_i32, %c0_i32_0 : i32, i32
  }
  func.func @transform_6(%arg0: i32) -> (i32, i32) {
    %c0_i32 = arith.constant 0 : i32
    %c0_i32_0 = arith.constant 0 : i32
    %c0_i32_1 = arith.constant 0 : i32
    return %c0_i32, %c0_i32_0 : i32, i32
  }
  func.func @transform_7(%arg0: i32) -> (i32, i32, i32) {
    %c0_i32 = arith.constant 0 : i32
    %c0_i32_0 = arith.constant 0 : i32
    %c0_i32_1 = arith.constant 0 : i32
    %c0_i32_2 = arith.constant 0 : i32
    return %c0_i32, %c0_i32_0, %c0_i32_1 : i32, i32, i32
  }
  func.func @transform_8(%arg0: i32) -> (i32, i32) {
    %c0_i32 = arith.constant 0 : i32
    %c0_i32_0 = arith.constant 0 : i32
    %c0_i32_1 = arith.constant 0 : i32
    return %c0_i32, %c0_i32_0 : i32, i32
  }
  func.func @transform_9(%arg0: i32) -> (i32, i32) {
    %c0_i32 = arith.constant 0 : i32
    %c0_i32_0 = arith.constant 0 : i32
    %c0_i32_1 = arith.constant 0 : i32
    return %c0_i32, %c0_i32_0 : i32, i32
  }
  func.func @transform_10(%arg0: i32) -> (i32, i32, i32) {
    %c0_i32 = arith.constant 0 : i32
    %c0_i32_0 = arith.constant 0 : i32
    %c0_i32_1 = arith.constant 0 : i32
    return %arg0, %c0_i32, %c0_i32_0 : i32, i32, i32
  }
  func.func @transform_11(%arg0: i32) -> (i32, i32, i32) {
    %c0_i32 = arith.constant 0 : i32
    %c0_i32_0 = arith.constant 0 : i32
    %c0_i32_1 = arith.constant 0 : i32
    return %arg0, %c0_i32, %c0_i32_0 : i32, i32, i32
  }
}

</mosaic_0001>

<bundles_post_ra>
// kernel: rnn_forward.1
= control target key start
LH: loop header
LB: loop body
LE: loop exit
PB: predicated region body
PF: predicated region fallthrough
CT: control target
= control target key end

     0   :  { %s1551_s17 = smov 0   ;;  %s2382_s0 = inlined_call_operand.vmem [shape: f32[16,8,4], index: 0, kind: input, shape index: {}]   ;;  %s2383_s1 = inlined_call_operand.vmem [shape: f32[4,128], index: 1, kind: input, shape index: {}]   ;;  %s2384_s2 = inlined_call_operand.vmem [shape: f32[128,128], index: 2, kind: input, shape index: {}]   ;;  %s2385_s3 = inlined_call_operand.vmem [shape: f32[1,128], index: 3, kind: input, shape index: {}]   ;;  %s2386_s4 = inlined_call_operand.vmem [shape: f32[128,128], index: 4, kind: input, shape index: {}]   ;;  %s2387_s5 = inlined_call_operand.vmem [shape: f32[128,128], index: 5, kind: input, shape index: {}]   ;;  %s2388_s6 = inlined_call_operand.vmem [shape: f32[1,128], index: 6, kind: input, shape index: {}]   ;;  %s2389_s7 = inlined_call_operand.vmem [shape: f32[2,8,128], index: 7, kind: input, shape index: {}]   ;;  %s2390_s8 = inlined_call_operand.vmem [shape: f32[128,128], index: 8, kind: input, shape index: {}]   ;;  %s2391_s9 = inlined_call_operand.vmem [shape: f32[1,128], index: 9, kind: input, shape index: {}]   ;;  %s2392_s10 = inlined_call_operand.vmem [shape: f32[16,2,4], index: 10, kind: output, shape index: {0}]   ;;  %s2393_s11 = inlined_call_operand.vmem [shape: f32[16,2,32], index: 11, kind: output, shape index: {1}]  }
   0x1 LB: > { %s1408_s18 = sadd.s32 4294967295, %s1489_s17   ;;  %p1412_p0 = scmp.ge.s32.totalorder %s1489_s17, 1  ;;  %s1489_s17 = sphi %s1551_s17, %s22_s17  }
   0x2   : > { %p341_p1 = scmp.lt.s32.totalorder %s1489_s17, 3 }
   0x4   : > { %p342_p2 = pnand %p1412_p0, %p341_p1 }
   0x5   : > { %s1413_s19 = sshll.u32 (!%p342_p2), %s1408_s18, 3  ;;  %p1419_p4 = scmp.ne.s32.totalorder (!%p342_p2), %s1408_s18, 0 }
   0x6   : > { %345 = sbr.rel (%p342_p2) target bundleno = 1438 (0x59e), region = 60  ;;  %p387_p3 = scmp.lt.s32.totalorder (!%p342_p2), %s1413_s19, 15 }
   0xb   : > { %s2395_s19 = smov (!%p387_p3, %s1413_s19), 15  ;;  %407 = sbr.rel (%p1419_p4) target bundleno = 19 (0x13), region = 64 }
   0xc   : > { %s1414_s20 = sshll.u32 %s2395_s19, 3  ;;  %s1416_s21 = sshll.u32 %s2395_s19, 1 }
   0xd   : > { %s1562_s24 = scalar_lea.vmem %s2382_s0, %s1414_s20  ;;  %s1567_s27 = scalar_lea.vmem %s2392_s10, %s1416_s21 }
   0xe   : > { %s1572_s30 = scalar_lea.vmem %s2393_s11, %s1416_s21 }
  0x10   : > { %v408_v0 = vld [vmem:[%s2389_s7] sm:$0xff]  ;;  %v409_v1 = vld [vmem:[%s2389_s7 + $0x8] sm:$0xff] }
  0x11   : > { %410 = vst [vmem:[#allocation2] sm:$0xff] %v408_v0 }
  0x12   : > { %411 = vst [vmem:[#allocation2 + $0x8] sm:$0xff] %v409_v1 }
  0x13 PF: > { %v1583_v2 = vld [vmem:[%s2384_s2 + $0x78] sm:$0xff]  ;;  %v1588_v3 = vld [vmem:[%s2384_s2 + $0x70] sm:$0xff]  ;;  %v1595_v4 = vld [vmem:[%s2384_s2 + $0x68] sm:$0xff]  ;;  %vm499_vm0 = vcmask 1043456   ;;  %vm474_vm1 = vcmask 31744   ;;  %vm1300_vm2 = vcmask 254976  }
  0x14   : > { %547 = vmatpush.msra.mxu1 %v1583_v2  ;;  %569 = vmatpush.msra.mxu3 %v1583_v2  ;;  %v1602_v5 = vld [vmem:[%s2384_s2 + $0x60] sm:$0xff]  ;;  %v1613_v8 = vld [vmem:[%s2384_s2 + $0x58] sm:$0xff]  ;;  %v1622_v9 = vld [vmem:[%s2384_s2 + $0x50] sm:$0xff]  ;;  %vm1309_vm6 = vcmask 25600  }
  0x15   : > { %v412_v6 = vld [vmem:[%s2383_s1] sm:$0xf]  ;;  %v1630_v10 = vld [vmem:[%s2387_s5 + $0x78] sm:$0xff]  ;;  %v1636_v11 = vld [vmem:[%s2384_s2 + $0x48] sm:$0xff] }
  0x16   : > { %548 = vmatpush.msra.mxu1 %v1588_v3  ;;  %570 = vmatpush.msra.mxu3 %v1588_v3  ;;  %v463_v7 = vld [vmem:[%s1562_s24] sm:$0xff]  ;;  %v1644_v12 = vld [vmem:[%s2387_s5 + $0x70] sm:$0xff]  ;;  %v1658_v14 = vld [vmem:[%s2387_s5 + $0x68] sm:$0xff] }
  0x17   : > { %1420 = vmatpush.msk.msra.mxu0 %vm499_vm0, %v412_v6  ;;  %1439 = vmatpush.msk.msra.mxu2 %vm499_vm0, %v412_v6  ;;  %v1650_v13 = vld [vmem:[%s2384_s2 + $0x40] sm:$0xff]  ;;  %v1664_v15 = vld [vmem:[%s2384_s2 + $0x38] sm:$0xff]  ;;  %v1678_v17 = vld [vmem:[%s2384_s2 + $0x30] sm:$0xff] }
  0x18   : > { %549 = vmatpush.msra.mxu1 %v1595_v4  ;;  %1421 = vmatmul.msk.f32.vlgmr.msra.gmra.mxu0 %vm474_vm1, %v463_v7  ;;  %v1672_v16 = vld [vmem:[%s2387_s5 + $0x60] sm:$0xff]  ;;  %v1686_v18 = vld [vmem:[%s2387_s5 + $0x58] sm:$0xff]  ;;  %v1692_v19 = vld [vmem:[%s2384_s2 + $0x28] sm:$0xff] }
  0x19   : > { %571 = vmatpush.msra.mxu3 %v1595_v4  ;;  %637 = vmatpush.msrb.mxu0 %v1583_v2  ;;  %v1700_v20 = vld [vmem:[%s2387_s5 + $0x50] sm:$0xff]  ;;  %v1706_v21 = vld [vmem:[%s2384_s2 + $0x20] sm:$0xff]  ;;  %v1714_v22 = vld [vmem:[%s2387_s5 + $0x48] sm:$0xff] }
  0x1a   : > { %550 = vmatpush.msra.mxu1 %v1602_v5  ;;  %725 = vmatpush.msrb.mxu2 %v1630_v10  ;;  %v1720_v23 = vld [vmem:[%s2384_s2 + $0x18] sm:$0xff]  ;;  %v1728_v24 = vld [vmem:[%s2387_s5 + $0x40] sm:$0xff]  ;;  %v1734_v25 = vld [vmem:[%s2384_s2 + $0x10] sm:$0xff] }
  0x1b   : > { %572 = vmatpush.msra.mxu3 %v1602_v5  ;;  %638 = vmatpush.msrb.mxu0 %v1588_v3  ;;  %v1743_v26 = vld [vmem:[%s2384_s2 + $0x8] sm:$0xff]  ;;  %v1751_v27 = vld [vmem:[%s2384_s2] sm:$0xff]  ;;  %v1759_v29 = vld [vmem:[%s2386_s4 + $0x78] sm:$0xff] }
  0x1c   : > { %551 = vmatpush.msra.mxu1 %v1613_v8  ;;  %726 = vmatpush.msrb.mxu2 %v1644_v12  ;;  %v544_v28 = vld [vmem:[#allocation2] sm:$0xff]  ;;  %v1767_v30 = vld [vmem:[%s2386_s4 + $0x70] sm:$0xff]  ;;  %v1775_v31 = vld [vmem:[%s2386_s4 + $0x68] sm:$0xff] }
  0x1d   : > { %573 = vmatpush.msra.mxu3 %v1613_v8  ;;  %639 = vmatpush.msrb.mxu0 %v1595_v4  ;;  %v1783_v32 = vld [vmem:[%s2386_s4 + $0x60] sm:$0xff]  ;;  %v1791_v33 = vld [vmem:[%s2386_s4 + $0x58] sm:$0xff]  ;;  %v1799_v34 = vld [vmem:[%s2386_s4 + $0x50] sm:$0xff] }
  0x1e   : > { %552 = vmatpush.msra.mxu1 %v1622_v9  ;;  %727 = vmatpush.msrb.mxu2 %v1658_v14  ;;  %v1807_v35 = vld [vmem:[%s2386_s4 + $0x48] sm:$0xff]  ;;  %v1815_v36 = vld [vmem:[%s2386_s4 + $0x40] sm:$0xff]  ;;  %v1823_v37 = vld [vmem:[%s2386_s4 + $0x38] sm:$0xff] }
  0x1f   : > { %574 = vmatpush.msra.mxu3 %v1622_v9  ;;  %640 = vmatpush.msrb.mxu0 %v1602_v5  ;;  %v1831_v38 = vld [vmem:[%s2386_s4 + $0x30] sm:$0xff]  ;;  %v1838_v39 = vld [vmem:[%s2386_s4 + $0x28] sm:$0xff]  ;;  %v1845_v40 = vld [vmem:[%s2386_s4 + $0x20] sm:$0xff] }
  0x20   : > { %553 = vmatpush.msra.mxu1 %v1636_v11  ;;  %728 = vmatpush.msrb.mxu2 %v1672_v16  ;;  %v1858_v41 = vld [vmem:[%s2387_s5 + $0x38] sm:$0xff]  ;;  %v1872_v43 = vld [vmem:[%s2387_s5 + $0x30] sm:$0xff]  ;;  %v1884_v45 = vld [vmem:[%s2387_s5 + $0x28] sm:$0xff] }
  0x21   : > { %575 = vmatpush.msra.mxu3 %v1636_v11  ;;  %641 = vmatpush.msrb.mxu0 %v1613_v8  ;;  %v1863_v42 = vld [vmem:[%s2386_s4 + $0x18] sm:$0xff]  ;;  %v1877_v44 = vld [vmem:[%s2386_s4 + $0x10] sm:$0xff]  ;;  %v1889_v46 = vld [vmem:[%s2386_s4 + $0x8] sm:$0xff] }
  0x22   : > { %554 = vmatpush.msra.mxu1 %v1650_v13  ;;  %729 = vmatpush.msrb.mxu2 %v1686_v18  ;;  %v1898_v47 = vld [vmem:[%s2387_s5 + $0x20] sm:$0xff]  ;;  %v1912_v49 = vld [vmem:[%s2387_s5 + $0x18] sm:$0xff]  ;;  %v1917_v50 = vld [vmem:[%s2387_s5 + $0x10] sm:$0xff] }
  0x23   : > { %576 = vmatpush.msra.mxu3 %v1650_v13  ;;  %642 = vmatpush.msrb.mxu0 %v1622_v9  ;;  %v1903_v48 = vld [vmem:[%s2386_s4] sm:$0xff]  ;;  %v464_v51 = vld [vmem:[%s1562_s24 + $0x8] sm:$0xff]  ;;  %v465_v54 = vld [vmem:[%s1562_s24 + $0x10] sm:$0xff] }
  0x24   : > { %555 = vmatpush.msra.mxu1 %v1664_v15  ;;  %730 = vmatpush.msrb.mxu2 %v1700_v20  ;;  %v1927_v52 = vld [vmem:[%s2387_s5 + $0x8] sm:$0xff]  ;;  %v1935_v53 = vld [vmem:[%s2387_s5] sm:$0xff]  ;;  %v466_v62 = vld [vmem:[%s1562_s24 + $0x18] sm:$0xff] }
  0x25   : > { %577 = vmatpush.msra.mxu3 %v1664_v15  ;;  %643 = vmatpush.msrb.mxu0 %v1636_v11  ;;  %v1956_v55 = vld [vmem:[%s2385_s3] ss:$0 sm:$0xff]  ;;  %v546_v61 = vld [vmem:[#allocation2 + $0x8] sm:$0xff] }
  0x26   : > { %556 = vmatpush.msra.mxu1 %v1678_v17  ;;  %731 = vmatpush.msrb.mxu2 %v1714_v22  ;;  %v467_v63 = vld [vmem:[%s1562_s24 + $0x20] sm:$0xff] }
  0x27   : > { %578 = vmatpush.msra.mxu3 %v1678_v17  ;;  %644 = vmatpush.msrb.mxu0 %v1650_v13 }
  0x28   : > { %557 = vmatpush.msra.mxu1 %v1692_v19  ;;  %732 = vmatpush.msrb.mxu2 %v1728_v24 }
  0x29   : > { %579 = vmatpush.msra.mxu3 %v1692_v19  ;;  %645 = vmatpush.msrb.mxu0 %v1664_v15 }
  0x2a   : > { %558 = vmatpush.msra.mxu1 %v1706_v21  ;;  %733 = vmatpush.msrb.mxu2 %v1858_v41 }
  0x2b   : > { %580 = vmatpush.msra.mxu3 %v1706_v21  ;;  %646 = vmatpush.msrb.mxu0 %v1678_v17 }
  0x2c   : > { %559 = vmatpush.msra.mxu1 %v1720_v23  ;;  %734 = vmatpush.msrb.mxu2 %v1872_v43 }
  0x2d   : > { %581 = vmatpush.msra.mxu3 %v1720_v23  ;;  %647 = vmatpush.msrb.mxu0 %v1692_v19 }
  0x2e   : > { %560 = vmatpush.msra.mxu1 %v1734_v25  ;;  %735 = vmatpush.msrb.mxu2 %v1884_v45 }
  0x2f   : > { %582 = vmatpush.msra.mxu3 %v1734_v25  ;;  %648 = vmatpush.msrb.mxu0 %v1706_v21 }
  0x30   : > { %561 = vmatpush.msra.mxu1 %v1743_v26  ;;  %1422 = vmatmul.msk.f32.gmra.mxu0 %vm474_vm1, %v464_v51  ;;  %v2033_v51 = vld [vmem:[%s2388_s6] ss:$0 sm:$0xff] }
  0x31   : > { %583 = vmatpush.msra.mxu3 %v1743_v26  ;;  %649 = vmatpush.msrb.mxu0 %v1720_v23 }
  0x32   : > { %562 = vmatpush.msra.mxu1 %v1751_v27  ;;  %736 = vmatpush.msrb.mxu2 %v1898_v47 }
  0x33   : > { %563 = vmatmul.f32.vlgmr.msra.gmra.mxu1 %v544_v28  ;;  %584 = vmatpush.msra.mxu3 %v1751_v27 }
  0x34   : > { %611 = vmatpush.msrb.mxu1 %v1759_v29  ;;  %650 = vmatpush.msrb.mxu0 %v1734_v25 }
  0x35   : > { %591 = vmatpush.msrb.mxu3 %v1630_v10  ;;  %737 = vmatpush.msrb.mxu2 %v1912_v49 }
  0x36   : > { %612 = vmatpush.msrb.mxu1 %v1767_v30  ;;  %651 = vmatpush.msrb.mxu0 %v1743_v26 }
  0x37   : > { %592 = vmatpush.msrb.mxu3 %v1644_v12  ;;  %738 = vmatpush.msrb.mxu2 %v1917_v50 }
  0x38   : > { %613 = vmatpush.msrb.mxu1 %v1775_v31  ;;  %652 = vmatpush.msrb.mxu0 %v1751_v27 }
  0x39   : > { %593 = vmatpush.msrb.mxu3 %v1658_v14  ;;  %739 = vmatpush.msrb.mxu2 %v1927_v52 }
  0x3a   : > { %614 = vmatpush.msrb.mxu1 %v1783_v32  ;;  %679 = vmatpush.msra.mxu0 %v1759_v29 }
  0x3b   : > { %594 = vmatpush.msrb.mxu3 %v1672_v16  ;;  %1423 = vmatmul.msk.f32.gmra.mxu0 %vm474_vm1, %v465_v54 }
  0x3c   : > { %615 = vmatpush.msrb.mxu1 %v1791_v33  ;;  %680 = vmatpush.msra.mxu0 %v1767_v30 }
  0x3d   : > { %595 = vmatpush.msrb.mxu3 %v1686_v18  ;;  %740 = vmatpush.msrb.mxu2 %v1935_v53 }
  0x3e   : > { %616 = vmatpush.msrb.mxu1 %v1799_v34  ;;  %681 = vmatpush.msra.mxu0 %v1775_v31 }
  0x3f   : > { %596 = vmatpush.msrb.mxu3 %v1700_v20  ;;  %1425 = vmatmul.msk.f32.vlgmr.msra.gmra.mxu2 %vm474_vm1, %v467_v63 }
  0x40   : > { %617 = vmatpush.msrb.mxu1 %v1807_v35  ;;  %682 = vmatpush.msra.mxu0 %v1783_v32 }
  0x41   : > { %597 = vmatpush.msrb.mxu3 %v1714_v22  ;;  %811 = vmatpush.msra.mxu2 %v1759_v29 }
  0x42   : > { %618 = vmatpush.msrb.mxu1 %v1815_v36  ;;  %683 = vmatpush.msra.mxu0 %v1791_v33 }
  0x43   : > { %598 = vmatpush.msrb.mxu3 %v1728_v24  ;;  %1424 = vmatmul.msk.f32.gmra.mxu0 %vm474_vm1, %v466_v62  ;;  %v470_v62 = vld [vmem:[%s1562_s24 + $0x38] sm:$0xff] }
  0x44   : > { %619 = vmatpush.msrb.mxu1 %v1823_v37  ;;  %684 = vmatpush.msra.mxu0 %v1799_v34 }
  0x45   : > { %599 = vmatpush.msrb.mxu3 %v1858_v41  ;;  %812 = vmatpush.msra.mxu2 %v1767_v30 }
  0x46   : > { %620 = vmatpush.msrb.mxu1 %v1831_v38  ;;  %685 = vmatpush.msra.mxu0 %v1807_v35 }
  0x47   : > { %600 = vmatpush.msrb.mxu3 %v1872_v43  ;;  %813 = vmatpush.msra.mxu2 %v1775_v31 }
  0x48   : > { %621 = vmatpush.msrb.mxu1 %v1838_v39  ;;  %686 = vmatpush.msra.mxu0 %v1815_v36 }
  0x49   : > { %601 = vmatpush.msrb.mxu3 %v1884_v45  ;;  %814 = vmatpush.msra.mxu2 %v1783_v32 }
  0x4a   : > { %622 = vmatpush.msrb.mxu1 %v1845_v40  ;;  %687 = vmatpush.msra.mxu0 %v1823_v37 }
  0x4b   : > { %602 = vmatpush.msrb.mxu3 %v1898_v47  ;;  %815 = vmatpush.msra.mxu2 %v1791_v33 }
  0x4c   : > { %688 = vmatpush.msra.mxu0 %v1831_v38  ;;  %623 = vmatpush.msrb.mxu1 %v1863_v42 }
  0x4d   : > { %603 = vmatpush.msrb.mxu3 %v1912_v49  ;;  %816 = vmatpush.msra.mxu2 %v1799_v34 }
  0x4e   : > { %689 = vmatpush.msra.mxu0 %v1838_v39  ;;  %624 = vmatpush.msrb.mxu1 %v1877_v44 }
  0x4f   : > { %604 = vmatpush.msrb.mxu3 %v1917_v50  ;;  %817 = vmatpush.msra.mxu2 %v1807_v35 }
  0x50   : > { %690 = vmatpush.msra.mxu0 %v1845_v40  ;;  %625 = vmatpush.msrb.mxu1 %v1889_v46 }
  0x51   : > { %605 = vmatpush.msrb.mxu3 %v1927_v52  ;;  %818 = vmatpush.msra.mxu2 %v1815_v36 }
  0x52   : > { %691 = vmatpush.msra.mxu0 %v1863_v42  ;;  %626 = vmatpush.msrb.mxu1 %v1903_v48 }
  0x53   : > { %606 = vmatpush.msrb.mxu3 %v1935_v53  ;;  %819 = vmatpush.msra.mxu2 %v1823_v37 }
  0x54   : > { %692 = vmatpush.msra.mxu0 %v1877_v44  ;;  %703 = vmatpush.msra.mxu1 %v1583_v2 }
  0x55   : > { %820 = vmatpush.msra.mxu2 %v1831_v38 }
  0x56   : > { %693 = vmatpush.msra.mxu0 %v1889_v46  ;;  %704 = vmatpush.msra.mxu1 %v1588_v3 }
  0x57   : > { %821 = vmatpush.msra.mxu2 %v1838_v39 }
  0x58   : > { %694 = vmatpush.msra.mxu0 %v1903_v48  ;;  %705 = vmatpush.msra.mxu1 %v1595_v4 }
  0x59   : > { %822 = vmatpush.msra.mxu2 %v1845_v40 }
  0x5a   : > { %706 = vmatpush.msra.mxu1 %v1602_v5 }
  0x5b   : > { %823 = vmatpush.msra.mxu2 %v1863_v42 }
  0x5c   : > { %707 = vmatpush.msra.mxu1 %v1613_v8 }
  0x5d   : > { %824 = vmatpush.msra.mxu2 %v1877_v44 }
  0x5e   : > { %708 = vmatpush.msra.mxu1 %v1622_v9 }
  0x5f   : > { %825 = vmatpush.msra.mxu2 %v1889_v46 }
  0x60   : > { %709 = vmatpush.msra.mxu1 %v1636_v11 }
  0x61   : > { %826 = vmatpush.msra.mxu2 %v1903_v48 }
  0x62   : > { %710 = vmatpush.msra.mxu1 %v1650_v13 }
  0x64   : > { %711 = vmatpush.msra.mxu1 %v1664_v15 }
  0x66   : > { %712 = vmatpush.msra.mxu1 %v1678_v17 }
  0x68   : > { %713 = vmatpush.msra.mxu1 %v1692_v19 }
  0x6a   : > { %714 = vmatpush.msra.mxu1 %v1706_v21 }
  0x6c   : > { %715 = vmatpush.msra.mxu1 %v1720_v23 }
  0x6e   : > { %716 = vmatpush.msra.mxu1 %v1734_v25 }
  0x70   : > { %717 = vmatpush.msra.mxu1 %v1743_v26 }
  0x72   : > { %718 = vmatpush.msra.mxu1 %v1751_v27 }
  0x95   : > { %v520_v56 = vpop.f32.mrf.mxu0 }
  0x96   : > { %v521_v57 = vadd.f32 %v1956_v55, %v520_v56 }
  0xad   : > { %v523_v0 = vpop.f32.mrf.mxu0 }
  0xae   : > { %v524_v1 = vadd.f32 %v1956_v55, %v523_v0 }
  0xb0   : > { %v564_v58 = vpop.f32.mrf.mxu1 }
  0xb1   : > { %v567_v59 = vadd.f32 %v564_v58, %v521_v57 }
  0xb3   : > { %v568_v60 = vmax.f32 %v567_v59, 0.0 }
  0xb5   : > { %585 = vmatmul.f32.vlgmr.msra.gmra.mxu3 %v568_v60  ;;  %627 = vmatmul.f32.vlgmr.msrb.gmra.mxu1 %v568_v60  ;;  %v468_v60 = vld [vmem:[%s1562_s24 + $0x28] sm:$0xff] }
  0xb6   : > { %659 = vmatpush.msra.mxu3 %v1630_v10  ;;  %791 = vmatpush.msrb.mxu1 %v1630_v10 }
  0xb7   : > { %1426 = vmatmul.msk.f32.gmra.mxu2 %vm474_vm1, %v468_v60 }
  0xb8   : > { %660 = vmatpush.msra.mxu3 %v1644_v12  ;;  %792 = vmatpush.msrb.mxu1 %v1644_v12  ;;  %v526_v63 = vpop.f32.mrf.mxu0 }
  0xba   : > { %661 = vmatpush.msra.mxu3 %v1658_v14  ;;  %793 = vmatpush.msrb.mxu1 %v1658_v14 }
  0xbc   : > { %662 = vmatpush.msra.mxu3 %v1672_v16  ;;  %794 = vmatpush.msrb.mxu1 %v1672_v16 }
  0xbd   : > { %607 = vmatmul.f32.vlgmr.msrb.gmra.mxu3 %v546_v61  ;;  %v469_v61 = vld [vmem:[%s1562_s24 + $0x30] sm:$0xff] }
  0xbe   : > { %663 = vmatpush.msra.mxu3 %v1686_v18  ;;  %795 = vmatpush.msrb.mxu1 %v1686_v18 }
  0xbf   : > { %1427 = vmatmul.msk.f32.gmra.mxu2 %vm474_vm1, %v469_v61 }
  0xc0   : > { %664 = vmatpush.msra.mxu3 %v1700_v20  ;;  %796 = vmatpush.msrb.mxu1 %v1700_v20  ;;  %v2100_v0 = vpop.f32.mrf.mxu0 }
  0xc2   : > { %665 = vmatpush.msra.mxu3 %v1714_v22  ;;  %797 = vmatpush.msrb.mxu1 %v1714_v22  ;;  %v2158_v61 = vpop.f32.mrf.mxu2 }
  0xc4   : > { %666 = vmatpush.msra.mxu3 %v1728_v24  ;;  %798 = vmatpush.msrb.mxu1 %v1728_v24 }
  0xc6   : > { %667 = vmatpush.msra.mxu3 %v1858_v41  ;;  %799 = vmatpush.msrb.mxu1 %v1858_v41 }
  0xc7   : > { %1428 = vmatmul.msk.f32.gmra.mxu2 %vm474_vm1, %v470_v62 }
  0xc8   : > { %668 = vmatpush.msra.mxu3 %v1872_v43  ;;  %800 = vmatpush.msrb.mxu1 %v1872_v43 }
  0xca   : > { %669 = vmatpush.msra.mxu3 %v1884_v45  ;;  %801 = vmatpush.msrb.mxu1 %v1884_v45 }
  0xcc   : > { %670 = vmatpush.msra.mxu3 %v1898_v47  ;;  %802 = vmatpush.msrb.mxu1 %v1898_v47 }
  0xce   : > { %671 = vmatpush.msra.mxu3 %v1912_v49  ;;  %803 = vmatpush.msrb.mxu1 %v1912_v49 }
  0xd0   : > { %672 = vmatpush.msra.mxu3 %v1917_v50  ;;  %804 = vmatpush.msrb.mxu1 %v1917_v50 }
  0xd2   : > { %673 = vmatpush.msra.mxu3 %v1927_v52  ;;  %805 = vmatpush.msrb.mxu1 %v1927_v52 }
  0xd4   : > { %674 = vmatpush.msra.mxu3 %v1935_v53  ;;  %806 = vmatpush.msrb.mxu1 %v1935_v53 }
  0xd6   : > { %745 = vmatpush.msrb.mxu3 %v1759_v29 }
  0xd8   : > { %746 = vmatpush.msrb.mxu3 %v1767_v30 }
  0xda   : > { %747 = vmatpush.msrb.mxu3 %v1775_v31 }
  0xdc   : > { %748 = vmatpush.msrb.mxu3 %v1783_v32 }
  0xde   : > { %749 = vmatpush.msrb.mxu3 %v1791_v33 }
  0xe0   : > { %750 = vmatpush.msrb.mxu3 %v1799_v34 }
  0xe2   : > { %751 = vmatpush.msrb.mxu3 %v1807_v35 }
  0xe4   : > { %752 = vmatpush.msrb.mxu3 %v1815_v36 }
  0xe6   : > { %753 = vmatpush.msrb.mxu3 %v1823_v37 }
  0xe8   : > { %754 = vmatpush.msrb.mxu3 %v1831_v38 }
  0xea   : > { %755 = vmatpush.msrb.mxu3 %v1838_v39 }
  0xec   : > { %756 = vmatpush.msrb.mxu3 %v1845_v40 }
  0xee   : > { %757 = vmatpush.msrb.mxu3 %v1863_v42 }
  0xf0   : > { %758 = vmatpush.msrb.mxu3 %v1877_v44 }
  0xf2   : > { %759 = vmatpush.msrb.mxu3 %v1889_v46 }
  0xf4   : > { %760 = vmatpush.msrb.mxu3 %v1903_v48 }
 0x132   : > { %v628_v54 = vpop.f32.mrf.mxu1 }
 0x138   : > { %v586_v6 = vpop.f32.mrf.mxu3 }
 0x139   : > { %v589_v7 = vadd.f32 %v586_v6, %v524_v1  ;;  %v527_v1 = vadd.f32 %v1956_v55, %v526_v63  ;;  %v530_v63 = vadd.f32 %v1956_v55, %v2100_v0 }
 0x13a   : > { %v2160_v62 = vpop.f32.mrf.mxu2 }
 0x13b   : > { %v590_v28 = vmax.f32 %v589_v7, 0.0 }
 0x13d   : > { %653 = vmatmul.f32.vlgmr.msrb.gmra.mxu0 %v590_v28 }
 0x13e   : > { %769 = vmatpush.msrb.mxu0 %v1583_v2 }
 0x140   : > { %v608_v56 = vpop.f32.mrf.mxu3  ;;  %770 = vmatpush.msrb.mxu0 %v1588_v3 }
 0x141   : > { %v629_v57 = vadd.f32 %v628_v54, %v608_v56 }
 0x142   : > { %771 = vmatpush.msrb.mxu0 %v1595_v4 }
 0x143   : > { %v634_v58 = vadd.f32 %v2033_v51, %v629_v57 }
 0x144   : > { %772 = vmatpush.msrb.mxu0 %v1602_v5 }
 0x145   : > { %v2042_v59 = vmax.f32 %v634_v58, 0.0  ;;  %695 = vmatmul.f32.vlgmr.msra.gmra.mxu0 %v590_v28 }
 0x146   : > { %773 = vmatpush.msrb.mxu0 %v1613_v8 }
 0x147   : > { %1301 = vst.msk [vmem:[%s1572_s30] sm:$0x3] %vm1300_vm2, %v2042_v59  ;;  %675 = vmatmul.f32.vlgmr.msra.gmra.mxu3 %v2042_v59 }
 0x148   : > { %774 = vmatpush.msrb.mxu0 %v1622_v9  ;;  %835 = vmatpush.msra.mxu3 %v1583_v2 }
 0x14a   : > { %775 = vmatpush.msrb.mxu0 %v1636_v11  ;;  %836 = vmatpush.msra.mxu3 %v1588_v3 }
 0x14c   : > { %776 = vmatpush.msrb.mxu0 %v1650_v13  ;;  %837 = vmatpush.msra.mxu3 %v1595_v4 }
 0x14e   : > { %777 = vmatpush.msrb.mxu0 %v1664_v15  ;;  %838 = vmatpush.msra.mxu3 %v1602_v5 }
 0x150   : > { %778 = vmatpush.msrb.mxu0 %v1678_v17  ;;  %839 = vmatpush.msra.mxu3 %v1613_v8 }
 0x152   : > { %779 = vmatpush.msrb.mxu0 %v1692_v19  ;;  %840 = vmatpush.msra.mxu3 %v1622_v9 }
 0x154   : > { %780 = vmatpush.msrb.mxu0 %v1706_v21  ;;  %841 = vmatpush.msra.mxu3 %v1636_v11 }
 0x156   : > { %781 = vmatpush.msrb.mxu0 %v1720_v23  ;;  %842 = vmatpush.msra.mxu3 %v1650_v13 }
 0x158   : > { %782 = vmatpush.msrb.mxu0 %v1734_v25  ;;  %843 = vmatpush.msra.mxu3 %v1664_v15 }
 0x15a   : > { %783 = vmatpush.msrb.mxu0 %v1743_v26  ;;  %844 = vmatpush.msra.mxu3 %v1678_v17 }
 0x15c   : > { %784 = vmatpush.msrb.mxu0 %v1751_v27  ;;  %845 = vmatpush.msra.mxu3 %v1692_v19 }
 0x15e   : > { %857 = vmatpush.msra.mxu0 %v1630_v10  ;;  %846 = vmatpush.msra.mxu3 %v1706_v21 }
 0x160   : > { %858 = vmatpush.msra.mxu0 %v1644_v12  ;;  %847 = vmatpush.msra.mxu3 %v1720_v23 }
 0x162   : > { %859 = vmatpush.msra.mxu0 %v1658_v14  ;;  %848 = vmatpush.msra.mxu3 %v1734_v25 }
 0x164   : > { %860 = vmatpush.msra.mxu0 %v1672_v16  ;;  %849 = vmatpush.msra.mxu3 %v1743_v26 }
 0x166   : > { %861 = vmatpush.msra.mxu0 %v1686_v18  ;;  %850 = vmatpush.msra.mxu3 %v1751_v27 }
 0x168   : > { %862 = vmatpush.msra.mxu0 %v1700_v20 }
 0x16a   : > { %863 = vmatpush.msra.mxu0 %v1714_v22 }
 0x16c   : > { %864 = vmatpush.msra.mxu0 %v1728_v24 }
 0x16e   : > { %865 = vmatpush.msra.mxu0 %v1858_v41 }
 0x170   : > { %866 = vmatpush.msra.mxu0 %v1872_v43 }
 0x172   : > { %867 = vmatpush.msra.mxu0 %v1884_v45 }
 0x174   : > { %868 = vmatpush.msra.mxu0 %v1898_v47 }
 0x176   : > { %869 = vmatpush.msra.mxu0 %v1912_v49 }
 0x178   : > { %870 = vmatpush.msra.mxu0 %v1917_v50 }
 0x17a   : > { %871 = vmatpush.msra.mxu0 %v1927_v52 }
 0x17c   : > { %872 = vmatpush.msra.mxu0 %v1935_v53 }
 0x1ba   : > { %v654_v6 = vpop.f32.mrf.mxu0 }
 0x1bb   : > { %v657_v7 = vadd.f32 %v654_v6, %v527_v1 }
 0x1bd   : > { %v658_v28 = vmax.f32 %v657_v7, 0.0 }
 0x1bf   : > { %719 = vmatmul.f32.vlgmr.msra.gmra.mxu1 %v658_v28  ;;  %761 = vmatmul.f32.vlgmr.msrb.gmra.mxu3 %v658_v28  ;;  %v2164_v28 = vpop.f32.mrf.mxu2 }
 0x1c0   : > { %877 = vmatpush.msra.mxu1 %v1759_v29  ;;  %923 = vmatpush.msrb.mxu3 %v1630_v10 }
 0x1c2   : > { %878 = vmatpush.msra.mxu1 %v1767_v30  ;;  %924 = vmatpush.msrb.mxu3 %v1644_v12  ;;  %v696_v54 = vpop.f32.mrf.mxu0 }
 0x1c4   : > { %879 = vmatpush.msra.mxu1 %v1775_v31  ;;  %925 = vmatpush.msrb.mxu3 %v1658_v14 }
 0x1c6   : > { %880 = vmatpush.msra.mxu1 %v1783_v32  ;;  %926 = vmatpush.msrb.mxu3 %v1672_v16 }
 0x1c7   : > { %v2174_v0 = vpop.f32.mrf.mxu2 }
 0x1c8   : > { %881 = vmatpush.msra.mxu1 %v1791_v33  ;;  %927 = vmatpush.msrb.mxu3 %v1686_v18 }
 0x1ca   : > { %v676_v56 = vpop.f32.mrf.mxu3  ;;  %882 = vmatpush.msra.mxu1 %v1799_v34  ;;  %928 = vmatpush.msrb.mxu3 %v1700_v20 }
 0x1cb   : > { %v697_v57 = vadd.f32 %v696_v54, %v676_v56 }
 0x1cc   : > { %883 = vmatpush.msra.mxu1 %v1807_v35  ;;  %929 = vmatpush.msrb.mxu3 %v1714_v22 }
 0x1cd   : > { %v699_v58 = vadd.f32 %v2033_v51, %v697_v57 }
 0x1ce   : > { %884 = vmatpush.msra.mxu1 %v1815_v36  ;;  %930 = vmatpush.msrb.mxu3 %v1728_v24 }
 0x1cf   : > { %v2120_v60 = vmax.f32 %v699_v58, 0.0 }
 0x1d0   : > { %885 = vmatpush.msra.mxu1 %v1823_v37  ;;  %931 = vmatpush.msrb.mxu3 %v1858_v41 }
 0x1d1   : > { %1302 = vst.msk [vmem:[%s1572_s30 + $0x2] sm:$0x3] %vm1300_vm2, %v2120_v60  ;;  %741 = vmatmul.f32.vlgmr.msrb.gmra.mxu2 %v2120_v60 }
 0x1d2   : > { %886 = vmatpush.msra.mxu1 %v1831_v38  ;;  %901 = vmatpush.msrb.mxu2 %v1583_v2 }
 0x1d3   : > { %932 = vmatpush.msrb.mxu3 %v1872_v43 }
 0x1d4   : > { %887 = vmatpush.msra.mxu1 %v1838_v39  ;;  %902 = vmatpush.msrb.mxu2 %v1588_v3 }
 0x1d5   : > { %933 = vmatpush.msrb.mxu3 %v1884_v45 }
 0x1d6   : > { %888 = vmatpush.msra.mxu1 %v1845_v40  ;;  %903 = vmatpush.msrb.mxu2 %v1595_v4 }
 0x1d7   : > { %934 = vmatpush.msrb.mxu3 %v1898_v47 }
 0x1d8   : > { %889 = vmatpush.msra.mxu1 %v1863_v42  ;;  %904 = vmatpush.msrb.mxu2 %v1602_v5 }
 0x1d9   : > { %935 = vmatpush.msrb.mxu3 %v1912_v49 }
 0x1da   : > { %890 = vmatpush.msra.mxu1 %v1877_v44  ;;  %905 = vmatpush.msrb.mxu2 %v1613_v8 }
 0x1db   : > { %936 = vmatpush.msrb.mxu3 %v1917_v50 }
 0x1dc   : > { %891 = vmatpush.msra.mxu1 %v1889_v46  ;;  %906 = vmatpush.msrb.mxu2 %v1622_v9 }
 0x1dd   : > { %937 = vmatpush.msrb.mxu3 %v1927_v52 }
 0x1de   : > { %892 = vmatpush.msra.mxu1 %v1903_v48  ;;  %907 = vmatpush.msrb.mxu2 %v1636_v11 }
 0x1df   : > { %938 = vmatpush.msrb.mxu3 %v1935_v53 }
 0x1e0   : > { %908 = vmatpush.msrb.mxu2 %v1650_v13 }
 0x1e2   : > { %909 = vmatpush.msrb.mxu2 %v1664_v15 }
 0x1e4   : > { %910 = vmatpush.msrb.mxu2 %v1678_v17 }
 0x1e6   : > { %911 = vmatpush.msrb.mxu2 %v1692_v19 }
 0x1e8   : > { %912 = vmatpush.msrb.mxu2 %v1706_v21 }
 0x1ea   : > { %913 = vmatpush.msrb.mxu2 %v1720_v23 }
 0x1ec   : > { %914 = vmatpush.msrb.mxu2 %v1734_v25 }
 0x1ee   : > { %915 = vmatpush.msrb.mxu2 %v1743_v26 }
 0x1f0   : > { %916 = vmatpush.msrb.mxu2 %v1751_v27 }
 0x23c   : > { %v720_v1 = vpop.f32.mrf.mxu1 }
 0x23d   : > { %v723_v6 = vadd.f32 %v720_v1, %v530_v63  ;;  %v2348_v1 = vld [vmem:[%s2391_s9] ss:$0 sm:$0xff] }
 0x23f   : > { %v724_v7 = vmax.f32 %v723_v6, 0.0 }
 0x241   : > { %785 = vmatmul.f32.vlgmr.msrb.gmra.mxu0 %v724_v7  ;;  %827 = vmatmul.f32.vlgmr.msra.gmra.mxu2 %v724_v7 }
 0x242   : > { %943 = vmatpush.msrb.mxu0 %v1759_v29  ;;  %989 = vmatpush.msra.mxu2 %v1630_v10  ;;  %v762_v54 = vpop.f32.mrf.mxu3 }
 0x244   : > { %944 = vmatpush.msrb.mxu0 %v1767_v30  ;;  %990 = vmatpush.msra.mxu2 %v1644_v12 }
 0x246   : > { %945 = vmatpush.msrb.mxu0 %v1775_v31  ;;  %991 = vmatpush.msra.mxu2 %v1658_v14 }
 0x248   : > { %946 = vmatpush.msrb.mxu0 %v1783_v32  ;;  %992 = vmatpush.msra.mxu2 %v1672_v16 }
 0x24a   : > { %947 = vmatpush.msrb.mxu0 %v1791_v33  ;;  %993 = vmatpush.msra.mxu2 %v1686_v18 }
 0x24c   : > { %948 = vmatpush.msrb.mxu0 %v1799_v34  ;;  %994 = vmatpush.msra.mxu2 %v1700_v20 }
 0x24e   : > { %949 = vmatpush.msrb.mxu0 %v1807_v35  ;;  %995 = vmatpush.msra.mxu2 %v1714_v22 }
 0x250   : > { %950 = vmatpush.msrb.mxu0 %v1815_v36  ;;  %996 = vmatpush.msra.mxu2 %v1728_v24 }
 0x252   : > { %951 = vmatpush.msrb.mxu0 %v1823_v37  ;;  %997 = vmatpush.msra.mxu2 %v1858_v41 }
 0x254   : > { %v742_v56 = vpop.f32.mrf.mxu2  ;;  %952 = vmatpush.msrb.mxu0 %v1831_v38  ;;  %998 = vmatpush.msra.mxu2 %v1872_v43 }
 0x255   : > { %v763_v57 = vadd.f32 %v762_v54, %v742_v56 }
 0x256   : > { %953 = vmatpush.msrb.mxu0 %v1838_v39  ;;  %999 = vmatpush.msra.mxu2 %v1884_v45 }
 0x257   : > { %v765_v58 = vadd.f32 %v2033_v51, %v763_v57 }
 0x258   : > { %954 = vmatpush.msrb.mxu0 %v1845_v40  ;;  %1000 = vmatpush.msra.mxu2 %v1898_v47 }
 0x259   : > { %v2193_v63 = vmax.f32 %v765_v58, 0.0 }
 0x25a   : > { %955 = vmatpush.msrb.mxu0 %v1863_v42  ;;  %1001 = vmatpush.msra.mxu2 %v1912_v49 }
 0x25b   : > { %1303 = vst.msk [vmem:[%s1572_s30 + $0x4] sm:$0x3] %vm1300_vm2, %v2193_v63  ;;  %807 = vmatmul.f32.vlgmr.msrb.gmra.mxu1 %v2193_v63 }
 0x25c   : > { %956 = vmatpush.msrb.mxu0 %v1877_v44  ;;  %967 = vmatpush.msrb.mxu1 %v1583_v2  ;;  %v533_v2 = vadd.f32 %v1956_v55, %v2158_v61 }
 0x25d   : > { %1002 = vmatpush.msra.mxu2 %v1917_v50 }
 0x25e   : > { %957 = vmatpush.msrb.mxu0 %v1889_v46  ;;  %968 = vmatpush.msrb.mxu1 %v1588_v3 }
 0x25f   : > { %1003 = vmatpush.msra.mxu2 %v1927_v52 }
 0x260   : > { %958 = vmatpush.msrb.mxu0 %v1903_v48  ;;  %969 = vmatpush.msrb.mxu1 %v1595_v4 }
 0x261   : > { %1004 = vmatpush.msra.mxu2 %v1935_v53 }
 0x262   : > { %970 = vmatpush.msrb.mxu1 %v1602_v5 }
 0x264   : > { %971 = vmatpush.msrb.mxu1 %v1613_v8 }
 0x266   : > { %972 = vmatpush.msrb.mxu1 %v1622_v9 }
 0x268   : > { %973 = vmatpush.msrb.mxu1 %v1636_v11 }
 0x26a   : > { %974 = vmatpush.msrb.mxu1 %v1650_v13 }
 0x26c   : > { %975 = vmatpush.msrb.mxu1 %v1664_v15 }
 0x26e   : > { %976 = vmatpush.msrb.mxu1 %v1678_v17 }
 0x270   : > { %977 = vmatpush.msrb.mxu1 %v1692_v19 }
 0x272   : > { %978 = vmatpush.msrb.mxu1 %v1706_v21 }
 0x274   : > { %979 = vmatpush.msrb.mxu1 %v1720_v23  ;;  %v1101_v23 = vld [vmem:[%s2390_s8 + $0x70] sm:$0xff] }
 0x276   : > { %980 = vmatpush.msrb.mxu1 %v1734_v25  ;;  %v1099_v25 = vld [vmem:[%s2390_s8 + $0x60] sm:$0xff] }
 0x278   : > { %981 = vmatpush.msrb.mxu1 %v1743_v26  ;;  %v1098_v26 = vld [vmem:[%s2390_s8 + $0x58] sm:$0xff] }
 0x27a   : > { %982 = vmatpush.msrb.mxu1 %v1751_v27  ;;  %v1097_v27 = vld [vmem:[%s2390_s8 + $0x50] sm:$0xff] }
 0x2be   : > { %v786_v3 = vpop.f32.mrf.mxu0 }
 0x2bf   : > { %v789_v4 = vadd.f32 %v786_v3, %v533_v2 }
 0x2c1   : > { %v790_v5 = vmax.f32 %v789_v4, 0.0 }
 0x2c3   : > { %851 = vmatmul.f32.vlgmr.msra.gmra.mxu3 %v790_v5  ;;  %893 = vmatmul.f32.vlgmr.msra.gmra.mxu1 %v790_v5 }
 0x2c4   : > { %1009 = vmatpush.msra.mxu3 %v1759_v29  ;;  %1053 = vmatpush.msra.mxu1 %v1759_v29  ;;  %v828_v8 = vpop.f32.mrf.mxu2  ;;  %v1096_v29 = vld [vmem:[%s2390_s8 + $0x48] sm:$0xff] }
 0x2c6   : > { %1010 = vmatpush.msra.mxu3 %v1767_v30  ;;  %1054 = vmatpush.msra.mxu1 %v1767_v30  ;;  %v1095_v30 = vld [vmem:[%s2390_s8 + $0x40] sm:$0xff] }
 0x2c8   : > { %1011 = vmatpush.msra.mxu3 %v1775_v31  ;;  %1055 = vmatpush.msra.mxu1 %v1775_v31  ;;  %v1094_v31 = vld [vmem:[%s2390_s8 + $0x38] sm:$0xff] }
 0x2ca   : > { %1012 = vmatpush.msra.mxu3 %v1783_v32  ;;  %1056 = vmatpush.msra.mxu1 %v1783_v32  ;;  %v1093_v32 = vld [vmem:[%s2390_s8 + $0x30] sm:$0xff] }
 0x2cc   : > { %1013 = vmatpush.msra.mxu3 %v1791_v33  ;;  %1057 = vmatpush.msra.mxu1 %v1791_v33  ;;  %v1092_v33 = vld [vmem:[%s2390_s8 + $0x28] sm:$0xff] }
 0x2ce   : > { %1014 = vmatpush.msra.mxu3 %v1799_v34  ;;  %1058 = vmatpush.msra.mxu1 %v1799_v34  ;;  %v1091_v34 = vld [vmem:[%s2390_s8 + $0x20] sm:$0xff] }
 0x2d0   : > { %1015 = vmatpush.msra.mxu3 %v1807_v35  ;;  %1059 = vmatpush.msra.mxu1 %v1807_v35  ;;  %v539_v35 = vadd.f32 %v1956_v55, %v2164_v28 }
 0x2d2   : > { %1016 = vmatpush.msra.mxu3 %v1815_v36  ;;  %1060 = vmatpush.msra.mxu1 %v1815_v36  ;;  %v1090_v36 = vld [vmem:[%s2390_s8 + $0x18] sm:$0xff] }
 0x2d4   : > { %1017 = vmatpush.msra.mxu3 %v1823_v37  ;;  %1061 = vmatpush.msra.mxu1 %v1823_v37  ;;  %v1089_v37 = vld [vmem:[%s2390_s8 + $0x10] sm:$0xff] }
 0x2d6   : > { %1018 = vmatpush.msra.mxu3 %v1831_v38  ;;  %1062 = vmatpush.msra.mxu1 %v1831_v38 }
 0x2d8   : > { %v808_v9 = vpop.f32.mrf.mxu1  ;;  %1019 = vmatpush.msra.mxu3 %v1838_v39  ;;  %1063 = vmatpush.msra.mxu1 %v1838_v39 }
 0x2d9   : > { %v829_v11 = vadd.f32 %v828_v8, %v808_v9 }
 0x2da   : > { %1020 = vmatpush.msra.mxu3 %v1845_v40  ;;  %1064 = vmatpush.msra.mxu1 %v1845_v40  ;;  %v1088_v40 = vld [vmem:[%s2390_s8 + $0x8] sm:$0xff] }
 0x2db   : > { %v831_v13 = vadd.f32 %v2033_v51, %v829_v11 }
 0x2dc   : > { %1021 = vmatpush.msra.mxu3 %v1863_v42  ;;  %1065 = vmatpush.msra.mxu1 %v1863_v42  ;;  %v1087_v42 = vld [vmem:[%s2390_s8] sm:$0xff] }
 0x2dd   : > { %v2252_v15 = vmax.f32 %v831_v13, 0.0 }
 0x2de   : > { %1022 = vmatpush.msra.mxu3 %v1877_v44  ;;  %1066 = vmatpush.msra.mxu1 %v1877_v44 }
 0x2df   : > { %1304 = vst.msk [vmem:[%s1572_s30 + $0x6] sm:$0x3] %vm1300_vm2, %v2252_v15  ;;  %873 = vmatmul.f32.vlgmr.msra.gmra.mxu0 %v2252_v15 }
 0x2e0   : > { %1023 = vmatpush.msra.mxu3 %v1889_v46  ;;  %1067 = vmatpush.msra.mxu1 %v1889_v46 }
 0x2e1   : > { %1033 = vmatpush.msra.mxu0 %v1630_v10  ;;  %v536_v10 = vadd.f32 %v1956_v55, %v2160_v62 }
 0x2e2   : > { %1024 = vmatpush.msra.mxu3 %v1903_v48  ;;  %1068 = vmatpush.msra.mxu1 %v1903_v48  ;;  %v542_v48 = vadd.f32 %v1956_v55, %v2174_v0 }
 0x2e3   : > { %1034 = vmatpush.msra.mxu0 %v1644_v12 }
 0x2e5   : > { %1035 = vmatpush.msra.mxu0 %v1658_v14 }
 0x2e7   : > { %1036 = vmatpush.msra.mxu0 %v1672_v16 }
 0x2e9   : > { %1037 = vmatpush.msra.mxu0 %v1686_v18 }
 0x2eb   : > { %1038 = vmatpush.msra.mxu0 %v1700_v20 }
 0x2ed   : > { %1039 = vmatpush.msra.mxu0 %v1714_v22  ;;  %v1102_v22 = vld [vmem:[%s2390_s8 + $0x78] sm:$0xff] }
 0x2ef   : > { %1040 = vmatpush.msra.mxu0 %v1728_v24  ;;  %v1100_v24 = vld [vmem:[%s2390_s8 + $0x68] sm:$0xff] }
 0x2f1   : > { %1041 = vmatpush.msra.mxu0 %v1858_v41 }
 0x2f3   : > { %1042 = vmatpush.msra.mxu0 %v1872_v43 }
 0x2f5   : > { %1043 = vmatpush.msra.mxu0 %v1884_v45 }
 0x2f7   : > { %1044 = vmatpush.msra.mxu0 %v1898_v47 }
 0x2f9   : > { %1045 = vmatpush.msra.mxu0 %v1912_v49 }
 0x2fb   : > { %1046 = vmatpush.msra.mxu0 %v1917_v50 }
 0x2fd   : > { %1047 = vmatpush.msra.mxu0 %v1927_v52 }
 0x2ff   : > { %1048 = vmatpush.msra.mxu0 %v1935_v53 }
 0x340   : > { %v894_v17 = vpop.f32.mrf.mxu1 }
 0x346   : > { %v852_v12 = vpop.f32.mrf.mxu3 }
 0x347   : > { %v855_v14 = vadd.f32 %v852_v12, %v536_v10 }
 0x349   : > { %v856_v16 = vmax.f32 %v855_v14, 0.0 }
 0x34b   : > { %917 = vmatmul.f32.vlgmr.msrb.gmra.mxu2 %v856_v16  ;;  %959 = vmatmul.f32.vlgmr.msrb.gmra.mxu0 %v856_v16 }
 0x34c   : > { %1107 = vmatpush.msrb.mxu2 %v1102_v22 }
 0x34e   : > { %1108 = vmatpush.msrb.mxu2 %v1101_v23 }
 0x350   : > { %1109 = vmatpush.msrb.mxu2 %v1100_v24 }
 0x352   : > { %1110 = vmatpush.msrb.mxu2 %v1099_v25 }
 0x354   : > { %1111 = vmatpush.msrb.mxu2 %v1098_v26 }
 0x356   : > { %1112 = vmatpush.msrb.mxu2 %v1097_v27 }
 0x358   : > { %1113 = vmatpush.msrb.mxu2 %v1096_v29 }
 0x35a   : > { %1114 = vmatpush.msrb.mxu2 %v1095_v30 }
 0x35c   : > { %v874_v18 = vpop.f32.mrf.mxu0  ;;  %1115 = vmatpush.msrb.mxu2 %v1094_v31 }
 0x35d   : > { %v895_v19 = vadd.f32 %v894_v17, %v874_v18 }
 0x35e   : > { %1116 = vmatpush.msrb.mxu2 %v1093_v32 }
 0x35f   : > { %v897_v20 = vadd.f32 %v2033_v51, %v895_v19 }
 0x360   : > { %1117 = vmatpush.msrb.mxu2 %v1092_v33 }
 0x361   : > { %v898_v21 = vmax.f32 %v897_v20, 0.0 }
 0x362   : > { %1118 = vmatpush.msrb.mxu2 %v1091_v34 }
 0x363   : > { %1305 = vst.msk [vmem:[%s1572_s30 + $0x8] sm:$0x3] %vm1300_vm2, %v898_v21  ;;  %939 = vmatmul.f32.vlgmr.msrb.gmra.mxu3 %v898_v21 }
 0x364   : > { %1119 = vmatpush.msrb.mxu2 %v1090_v36 }
 0x366   : > { %1120 = vmatpush.msrb.mxu2 %v1089_v37 }
 0x368   : > { %1121 = vmatpush.msrb.mxu2 %v1088_v40 }
 0x36a   : > { %1122 = vmatpush.msrb.mxu2 %v1087_v42 }
 0x3c8   : > { %v960_v43 = vpop.f32.mrf.mxu0 }
 0x3ce   : > { %v918_v38 = vpop.f32.mrf.mxu2 }
 0x3cf   : > { %v921_v39 = vadd.f32 %v918_v38, %v539_v35 }
 0x3d1   : > { %v922_v41 = vmax.f32 %v921_v39, 0.0 }
 0x3d3   : > { %983 = vmatmul.f32.vlgmr.msrb.gmra.mxu1 %v922_v41  ;;  %1025 = vmatmul.f32.vlgmr.msra.gmra.mxu3 %v922_v41 }
 0x3e6   : > { %v940_v44 = vpop.f32.mrf.mxu3 }
 0x3e7   : > { %v961_v45 = vadd.f32 %v960_v43, %v940_v44 }
 0x3e9   : > { %v963_v46 = vadd.f32 %v2033_v51, %v961_v45 }
 0x3eb   : > { %v964_v47 = vmax.f32 %v963_v46, 0.0 }
 0x3ed   : > { %1306 = vst.msk [vmem:[%s1572_s30 + $0xa] sm:$0x3] %vm1300_vm2, %v964_v47  ;;  %1005 = vmatmul.f32.vlgmr.msra.gmra.mxu2 %v964_v47 }
 0x3f5   : > { %1123 = vmatmul.f32.vlgmr.msrb.gmra.mxu2 %v2042_v59 }
 0x3fd   : > { %1126 = vmatmul.f32.gmra.mxu2 %v2120_v60 }
 0x405   : > { %1129 = vmatmul.f32.gmra.mxu2 %v2193_v63 }
 0x40d   : > { %1132 = vmatmul.f32.gmra.mxu2 %v2252_v15 }
 0x415   : > { %1135 = vmatmul.f32.gmra.mxu2 %v898_v21 }
 0x41d   : > { %1138 = vmatmul.f32.gmra.mxu2 %v964_v47 }
 0x450   : > { %v984_v49 = vpop.f32.mrf.mxu1 }
 0x451   : > { %v987_v50 = vadd.f32 %v984_v49, %v542_v48 }
 0x453   : > { %v988_v52 = vmax.f32 %v987_v50, 0.0 }
 0x455   : > { %1077 = vst [vmem:[#allocation2] sm:$0xff] %v988_v52  ;;  %1069 = vmatmul.f32.vlgmr.msra.gmra.mxu1 %v988_v52 }
 0x456   : > { %v1026_v53 = vpop.f32.mrf.mxu3 }
 0x470   : > { %v1006_v61 = vpop.f32.mrf.mxu2 }
 0x471   : > { %v1027_v59 = vadd.f32 %v1026_v53, %v1006_v61 }
 0x473   : > { %v1029_v60 = vadd.f32 %v2033_v51, %v1027_v59 }
 0x475   : > { %v1030_v62 = vmax.f32 %v1029_v60, 0.0 }
 0x477   : > { %1307 = vst.msk [vmem:[%s1572_s30 + $0xc] sm:$0x3] %vm1300_vm2, %v1030_v62  ;;  %1049 = vmatmul.f32.vlgmr.msra.gmra.mxu0 %v1030_v62  ;;  %1141 = vmatmul.f32.gmra.mxu2 %v1030_v62 }
 0x478   : > { %v1124_v55 = vpop.f32.mrf.mxu2 }
 0x479   : > { %v1125_v6 = vadd.f32 %v2348_v1, %v1124_v55 }
 0x47b   : > { %v1429_v7 = vmul.f32 -1.442695, %v1125_v6 }
 0x47d   : > { %1451 = vpow2.f32 %v1429_v7 }
 0x480   : > { %v1127_v28 = vpop.f32.mrf.mxu2 }
 0x481   : > { %v1128_v0 = vadd.f32 %v2348_v1, %v1127_v28 }
 0x483   : > { %v1452_v54 = vpop.eup %1451  ;;  %v1430_v56 = vmul.f32 -1.442695, %v1128_v0 }
 0x484   : > { %v1172_v57 = vadd.f32 1.0, %v1452_v54 }
 0x485   : > { %1453 = vpow2.f32 %v1430_v56 }
 0x486   : > { %1455 = vrcp.f32 %v1172_v57  ;;  %v1191_v11 = vand.u32 2147483648, %v1172_v57  ;;  %v1189_v10 = vand.u32 2147483647, %v1172_v57  ;;  %vm1185_vm4 = vweird.f32 %v1172_v57 }
 0x488   : > { %v1130_v58 = vpop.f32.mrf.mxu2  ;;  %v1192_v19 = vor.u32 1.1754944e-38, %v1191_v11  ;;  %vm1190_vm7 = vcmp.eq.f32.partialorder %v1189_v10, 8.507059e+37 }
 0x489   : > { %v1131_v63 = vadd.f32 %v2348_v1, %v1130_v58 }
 0x48b   : > { %v1454_v2 = vpop.eup %1453  ;;  %v1431_v3 = vmul.f32 -1.442695, %v1131_v63 }
 0x48c   : > { %v1456_v4 = vpop.eup %1455  ;;  %v1173_v5 = vadd.f32 1.0, %v1454_v2 }
 0x48d   : > { %v1181_v8 = vmul.f32 %v1456_v4, %v1172_v57  ;;  %1457 = vpow2.f32 %v1431_v3  ;;  %vm1186_vm3 = vweird.f32 %v1456_v4 }
 0x48e   : > { %1459 = vrcp.f32 %v1173_v5  ;;  %vm1187_vm5 = vmor %vm1185_vm4, %vm1186_vm3  ;;  %v1206_v25 = vand.u32 2147483648, %v1173_v5  ;;  %v1204_v29 = vand.u32 2147483647, %v1173_v5  ;;  %vm1200_vm9 = vweird.f32 %v1173_v5 }
 0x48f   : > { %v1182_v9 = vsub.f32 1.0, %v1181_v8 }
 0x490   : > { %v1133_v13 = vpop.f32.mrf.mxu2  ;;  %v1207_v35 = vor.u32 1.1754944e-38, %v1206_v25  ;;  %vm1205_vm11 = vcmp.eq.f32.partialorder %v1204_v29, 8.507059e+37 }
 0x491   : > { %v1183_v15 = vmul.f32 %v1456_v4, %v1182_v9  ;;  %v1134_v12 = vadd.f32 %v2348_v1, %v1133_v13 }
 0x493   : > { %v1458_v14 = vpop.eup %1457  ;;  %v1184_v16 = vadd.f32 %v1456_v4, %v1183_v15  ;;  %v1432_v17 = vmul.f32 -1.442695, %v1134_v12 }
 0x494   : > { %v1460_v18 = vpop.eup %1459  ;;  %v1174_v20 = vadd.f32 1.0, %v1458_v14 }
 0x495   : > { %v1188_v21 = vsel %vm1187_vm5, %v1456_v4, %v1184_v16  ;;  %v1196_v22 = vmul.f32 %v1460_v18, %v1173_v5  ;;  %1461 = vpow2.f32 %v1432_v17  ;;  %vm1201_vm8 = vweird.f32 %v1460_v18 }
 0x496   : > { %v1193_v23 = vsel %vm1190_vm7, %v1192_v19, %v1188_v21  ;;  %1463 = vrcp.f32 %v1174_v20  ;;  %vm1202_vm10 = vmor %vm1200_vm9, %vm1201_vm8  ;;  %v1221_v41 = vand.u32 2147483648, %v1174_v20  ;;  %v1219_v44 = vand.u32 2147483647, %v1174_v20 }
 0x497   : > { %1310 = vst.msk [vmem:[%s1567_s27] sm:$0x3] %vm1309_vm6, %v1193_v23  ;;  %v1197_v24 = vsub.f32 1.0, %v1196_v22  ;;  %vm1215_vm13 = vweird.f32 %v1174_v20 }
 0x498   : > { %v1136_v26 = vpop.f32.mrf.mxu2  ;;  %v1222_v50 = vor.u32 1.1754944e-38, %v1221_v41  ;;  %vm1220_vm15 = vcmp.eq.f32.partialorder %v1219_v44, 8.507059e+37 }
 0x499   : > { %v1198_v27 = vmul.f32 %v1460_v18, %v1197_v24  ;;  %v1137_v30 = vadd.f32 %v2348_v1, %v1136_v26 }
 0x49b   : > { %v1462_v31 = vpop.eup %1461  ;;  %v1199_v32 = vadd.f32 %v1460_v18, %v1198_v27  ;;  %v1433_v33 = vmul.f32 -1.442695, %v1137_v30 }
 0x49c   : > { %v1464_v34 = vpop.eup %1463  ;;  %v1175_v36 = vadd.f32 1.0, %v1462_v31 }
 0x49d   : > { %v1203_v37 = vsel %vm1202_vm10, %v1460_v18, %v1199_v32  ;;  %v1211_v38 = vmul.f32 %v1464_v34, %v1174_v20  ;;  %1465 = vpow2.f32 %v1433_v33  ;;  %vm1216_vm12 = vweird.f32 %v1464_v34 }
 0x49e   : > { %v1208_v39 = vsel %vm1205_vm11, %v1207_v35, %v1203_v37  ;;  %1467 = vrcp.f32 %v1175_v36  ;;  %vm1217_vm14 = vmor %vm1215_vm13, %vm1216_vm12  ;;  %v1236_v62 = vand.u32 2147483648, %v1175_v36  ;;  %v1234_v6 = vand.u32 2147483647, %v1175_v36 }
 0x49f   : > { %1311 = vst.msk [vmem:[%s1567_s27 + $0x2] sm:$0x3] %vm1309_vm6, %v1208_v39  ;;  %v1212_v40 = vsub.f32 1.0, %v1211_v38  ;;  %vm1230_vm1 = vweird.f32 %v1175_v36 }
 0x4a0   : > { %v1139_v42 = vpop.f32.mrf.mxu2  ;;  %v1237_v54 = vor.u32 1.1754944e-38, %v1236_v62  ;;  %vm1235_vm4 = vcmp.eq.f32.partialorder %v1234_v6, 8.507059e+37 }
 0x4a1   : > { %v1213_v43 = vmul.f32 %v1464_v34, %v1212_v40  ;;  %v1140_v45 = vadd.f32 %v2348_v1, %v1139_v42 }
 0x4a3   : > { %v1466_v46 = vpop.eup %1465  ;;  %v1214_v47 = vadd.f32 %v1464_v34, %v1213_v43  ;;  %v1434_v48 = vmul.f32 -1.442695, %v1140_v45 }
 0x4a4   : > { %v1468_v49 = vpop.eup %1467  ;;  %v1176_v52 = vadd.f32 1.0, %v1466_v46 }
 0x4a5   : > { %v1218_v53 = vsel %vm1217_vm14, %v1464_v34, %v1214_v47  ;;  %v1226_v61 = vmul.f32 %v1468_v49, %v1175_v36  ;;  %1469 = vpow2.f32 %v1434_v48  ;;  %vm1231_vm0 = vweird.f32 %v1468_v49 }
 0x4a6   : > { %v1223_v59 = vsel %vm1220_vm15, %v1222_v50, %v1218_v53  ;;  %1471 = vrcp.f32 %v1176_v52  ;;  %vm1232_vm3 = vmor %vm1230_vm1, %vm1231_vm0  ;;  %v1251_v3 = vand.u32 2147483648, %v1176_v52  ;;  %v1249_v5 = vand.u32 2147483647, %v1176_v52 }
 0x4a7   : > { %1312 = vst.msk [vmem:[%s1567_s27 + $0x4] sm:$0x3] %vm1309_vm6, %v1223_v59  ;;  %v1227_v60 = vsub.f32 1.0, %v1226_v61  ;;  %vm1245_vm7 = vweird.f32 %v1176_v52 }
 0x4a8   : > { %v1252_v11 = vor.u32 1.1754944e-38, %v1251_v3  ;;  %vm1250_vm9 = vcmp.eq.f32.partialorder %v1249_v5, 8.507059e+37 }
 0x4a9   : > { %v1228_v55 = vmul.f32 %v1468_v49, %v1227_v60 }
 0x4ab   : > { %v1470_v7 = vpop.eup %1469  ;;  %v1229_v28 = vadd.f32 %v1468_v49, %v1228_v55 }
 0x4ac   : > { %v1472_v0 = vpop.eup %1471  ;;  %v1177_v56 = vadd.f32 1.0, %v1470_v7 }
 0x4ad   : > { %v1233_v57 = vsel %vm1232_vm3, %v1468_v49, %v1229_v28  ;;  %v1241_v58 = vmul.f32 %v1472_v0, %v1176_v52  ;;  %vm1246_vm5 = vweird.f32 %v1472_v0 }
 0x4ae   : > { %v1238_v63 = vsel %vm1235_vm4, %v1237_v54, %v1233_v57  ;;  %1473 = vrcp.f32 %v1177_v56  ;;  %vm1247_vm8 = vmor %vm1245_vm7, %vm1246_vm5  ;;  %v1266_v14 = vand.u32 2147483648, %v1177_v56  ;;  %v1264_v17 = vand.u32 2147483647, %v1177_v56 }
 0x4af   : > { %1313 = vst.msk [vmem:[%s1567_s27 + $0x6] sm:$0x3] %vm1309_vm6, %v1238_v63  ;;  %v1242_v2 = vsub.f32 1.0, %v1241_v58  ;;  %vm1260_vm11 = vweird.f32 %v1177_v56 }
 0x4b0   : > { %v1267_v19 = vor.u32 1.1754944e-38, %v1266_v14  ;;  %vm1265_vm13 = vcmp.eq.f32.partialorder %v1264_v17, 8.507059e+37 }
 0x4b1   : > { %v1243_v4 = vmul.f32 %v1472_v0, %v1242_v2 }
 0x4b3   : > { %v1244_v8 = vadd.f32 %v1472_v0, %v1243_v4 }
 0x4b4   : > { %v1474_v9 = vpop.eup %1473 }
 0x4b5   : > { %v1248_v13 = vsel %vm1247_vm8, %v1472_v0, %v1244_v8  ;;  %v1256_v15 = vmul.f32 %v1474_v9, %v1177_v56  ;;  %vm1261_vm10 = vweird.f32 %v1474_v9 }
 0x4b6   : > { %v1253_v10 = vsel %vm1250_vm9, %v1252_v11, %v1248_v13  ;;  %vm1262_vm12 = vmor %vm1260_vm11, %vm1261_vm10 }
 0x4b7   : > { %1314 = vst.msk [vmem:[%s1567_s27 + $0x8] sm:$0x3] %vm1309_vm6, %v1253_v10  ;;  %v1257_v12 = vsub.f32 1.0, %v1256_v15 }
 0x4b9   : > { %v1258_v16 = vmul.f32 %v1474_v9, %v1257_v12 }
 0x4bb   : > { %v1259_v18 = vadd.f32 %v1474_v9, %v1258_v16 }
 0x4bd   : > { %v1263_v20 = vsel %vm1262_vm12, %v1474_v9, %v1259_v18 }
 0x4be   : > { %v1268_v21 = vsel %vm1265_vm13, %v1267_v19, %v1263_v20 }
 0x4bf   : > { %1315 = vst.msk [vmem:[%s1567_s27 + $0xa] sm:$0x3] %vm1309_vm6, %v1268_v21 }
 0x4d2   : > { %v1070_v22 = vpop.f32.mrf.mxu1 }
 0x4f4   : > { %v1050_v23 = vpop.f32.mrf.mxu0 }
 0x4f5   : > { %v1071_v24 = vadd.f32 %v1070_v22, %v1050_v23 }
 0x4f7   : > { %v1073_v25 = vadd.f32 %v2033_v51, %v1071_v24 }
 0x4f9   : > { %v1074_v26 = vmax.f32 %v1073_v25, 0.0 }
 0x4fa   : > { %v1142_v27 = vpop.f32.mrf.mxu2 }
 0x4fb   : > { %1078 = vst [vmem:[#allocation2 + $0x8] sm:$0xff] %v1074_v26  ;;  %v1143_v29 = vadd.f32 %v2348_v1, %v1142_v27  ;;  %1144 = vmatmul.f32.gmra.mxu2 %v1074_v26 }
 0x4fc   : > { %1308 = vst.msk [vmem:[%s1572_s30 + $0xe] sm:$0x3] %vm1300_vm2, %v1074_v26 }
 0x4fd   : > { %v1435_v30 = vmul.f32 -1.442695, %v1143_v29 }
 0x4ff   : > { %1475 = vpow2.f32 %v1435_v30 }
 0x505   : > { %v1476_v31 = vpop.eup %1475 }
 0x506   : > { %v1178_v32 = vadd.f32 1.0, %v1476_v31 }
 0x508   : > { %1477 = vrcp.f32 %v1178_v32  ;;  %v1281_v36 = vand.u32 2147483648, %v1178_v32  ;;  %v1279_v51 = vand.u32 2147483647, %v1178_v32  ;;  %vm1275_vm15 = vweird.f32 %v1178_v32 }
 0x50a   : > { %v1282_v39 = vor.u32 1.1754944e-38, %v1281_v36  ;;  %vm1280_vm1 = vcmp.eq.f32.partialorder %v1279_v51, 8.507059e+37 }
 0x50e   : > { %v1478_v33 = vpop.eup %1477 }
 0x50f   : > { %v1271_v34 = vmul.f32 %v1478_v33, %v1178_v32  ;;  %vm1276_vm14 = vweird.f32 %v1478_v33 }
 0x510   : > { %vm1277_vm0 = vmor %vm1275_vm15, %vm1276_vm14 }
 0x511   : > { %v1272_v35 = vsub.f32 1.0, %v1271_v34 }
 0x513   : > { %v1273_v37 = vmul.f32 %v1478_v33, %v1272_v35 }
 0x515   : > { %v1274_v38 = vadd.f32 %v1478_v33, %v1273_v37 }
 0x517   : > { %v1278_v40 = vsel %vm1277_vm0, %v1478_v33, %v1274_v38 }
 0x518   : > { %v1283_v41 = vsel %vm1280_vm1, %v1282_v39, %v1278_v40 }
 0x519   : > { %1316 = vst.msk [vmem:[%s1567_s27 + $0xc] sm:$0x3] %vm1309_vm6, %v1283_v41 }
 0x57e   : > { %v1145_v42 = vpop.f32.mrf.mxu2 }
 0x57f   : > { %v1146_v43 = vadd.f32 %v2348_v1, %v1145_v42 }
 0x581   : > { %v1436_v44 = vmul.f32 -1.442695, %v1146_v43 }
 0x583   : > { %1479 = vpow2.f32 %v1436_v44 }
 0x589   : > { %v1480_v45 = vpop.eup %1479 }
 0x58a   : > { %v1179_v46 = vadd.f32 1.0, %v1480_v45 }
 0x58c   : > { %1481 = vrcp.f32 %v1179_v46  ;;  %v1296_v50 = vand.u32 2147483648, %v1179_v46  ;;  %v1294_v53 = vand.u32 2147483647, %v1179_v46  ;;  %vm1290_vm3 = vweird.f32 %v1179_v46 }
 0x58e   : > { %v1297_v59 = vor.u32 1.1754944e-38, %v1296_v50  ;;  %vm1295_vm5 = vcmp.eq.f32.partialorder %v1294_v53, 8.507059e+37 }
 0x592   : > { %v1482_v47 = vpop.eup %1481 }
 0x593   : > { %v1286_v48 = vmul.f32 %v1482_v47, %v1179_v46  ;;  %vm1291_vm2 = vweird.f32 %v1482_v47 }
 0x594   : > { %vm1292_vm4 = vmor %vm1290_vm3, %vm1291_vm2 }
 0x595   : > { %v1287_v49 = vsub.f32 1.0, %v1286_v48 }
 0x597   : > { %v1288_v52 = vmul.f32 %v1482_v47, %v1287_v49 }
 0x599   : > { %v1289_v61 = vadd.f32 %v1482_v47, %v1288_v52 }
 0x59b   : > { %v1293_v60 = vsel %vm1292_vm4, %v1482_v47, %v1289_v61 }
 0x59c   : > { %v1298_v1 = vsel %vm1295_vm5, %v1297_v59, %v1293_v60 }
 0x59d   : > { %1317 = vst.msk [vmem:[%s1567_s27 + $0xe] sm:$0x3] %vm1309_vm6, %v1298_v1 }
 0x59e PF: > { %s22_s17 = sadd.s32 1, %s1489_s17  }
 0x59f   : > { %p19_p5 = scmp.ge.s32.totalorder %s22_s17, 4  }
 0x5a1   :  { %21 = sbr.rel (!%p19_p5) target bundleno = 1 (0x1), region = 114 }

</bundles_post_ra>
